<compile_context>
chip_gen: v5e
topology: v5e:2x2
jax: 0.10.0
libtpu: 0.0.40
codegen_flags: <defaults>
</compile_context>

<pallas_src>
import math

import jax
import jax.numpy as jnp
from jax.experimental import pallas as pl
from jax.experimental.pallas import tpu as pltpu


KERNEL_SIZE = 5  # rho conv kernel width (SimpleConv-style architecture)


def to_multiple(x, multiple):
    if x % multiple == 0:
        return x
    return x + multiple - x % multiple


# ---------------------------------------------------------------------------
# Fused ConvCNP forward kernel (one batch element per grid step)
# ---------------------------------------------------------------------------
def _make_convcnp_kernel(num_points, n_layers, ksize):
    pad = (ksize - 1) // 2
    side = pad * n_layers          # grid padding consumed by the rho CNN
    L = num_points

    def kernel(*refs):
        (inv2_l0_ref, head_inv2_ref, head_w_ref, head_b_ref,   # SMEM scalars
         xc_ref, yc_ref, grid_ref, xt_ref, w0_ref, b0_ref) = refs[:10]
        conv_refs = refs[10:10 + 2 * n_layers]
        mean_ref, sigma_ref = refs[10 + 2 * n_layers:]

        xg_pad = grid_ref[...]                       # (1, L + 2*side) lane-dense grid
        xc = xc_ref[0]                               # (n_ctx, 1) observation locations
        yc = yc_ref[0]                               # (n_ctx, 1) observation values

        # ---------------- l0 ConvDeepSet (use_density=True) -----------------
        d = xg_pad - xc                              # (n_ctx, W0)  grid on lanes
        d2 = d * d
        e_den = jnp.exp((-0.5 * inv2_l0_ref[0]) * d2)            # density channel
        e_val = jnp.exp((-0.5 * inv2_l0_ref[1]) * d2)            # value channel
        density = jnp.sum(e_den, axis=0, keepdims=True)          # (1, W0)
        signal = jnp.sum(e_val * yc, axis=0, keepdims=True)      # (1, W0)
        normalized = signal / (density + 1e-8)
        # pointwise linear g (2 -> C0) + sigmoid, channels-first result (C0, W0)
        h = (w0_ref[:, 0:1] * density + w0_ref[:, 1:2] * normalized
             + b0_ref[...])
        h = jax.nn.sigmoid(h)

        # Zero the padded grid columns so the conv 'same' zero padding is exact.
        W = L + 2 * side
        lo = side
        col = jax.lax.broadcasted_iota(jnp.int32, (1, W), 1)
        h = jnp.where((col >= lo) & (col < lo + L), h, 0.0)

        # ---- rho: stack of 1-D convs ('same', stride 1), channels-first ----
        for i in range(n_layers):
            w2_ref = conv_refs[2 * i]                # (Cout, K*Cin)
            cb_ref = conv_refs[2 * i + 1]            # (Cout, 1)
            W_out = W - 2 * pad
            # im2col: stack the K shifted views on the contraction axis so the
            # whole layer is ONE MXU matmul with a K*Cin contraction and a
            # lane-dense (grid-length) output.
            taps = [h[:, k:k + W_out] for k in range(ksize)]
            im2col = jnp.concatenate(taps, axis=0)   # (K*Cin, W_out)
            h = jnp.dot(w2_ref[...], im2col,
                        preferred_element_type=jnp.float32)      # (Cout, W_out)
            h = h + cb_ref[...]
            W = W_out
            lo = lo - pad
            if i < n_layers - 1:
                h = jnp.maximum(h, 0.0)              # ReLU between layers
                col = jax.lax.broadcasted_iota(jnp.int32, (1, W), 1)
                h = jnp.where((col >= lo) & (col < lo + L), h, 0.0)

        # After the last layer the representation is exactly aligned with the
        # real grid: (C_rho, L). Trace-time equivalent of "Shape changed." check.
        if h.shape[1] != L:
            raise RuntimeError("Shape changed.")

        # ------ mean / sigma ConvDeepSets (use_density=False), fused --------
        c_rho = h.shape[0]
        xg = xg_pad[:, side:side + L]                # (1, L) real grid locations
        xt = xt_ref[0]                               # (n_tgt, 1) target locations
        dg = xt - xg                                 # (n_tgt, L)
        dg2 = dg * dg
        acc_m = jnp.zeros(dg2.shape, jnp.float32)
        acc_s = jnp.zeros(dg2.shape, jnp.float32)
        for c in range(c_rho):
            hc = h[c:c + 1, :]                                      # (1, L)
            # Fold the head weight into the small (1, L) row first (cheaper
            # than scaling the (n_tgt, L) RBF matrix).
            whc_m = head_w_ref[c] * hc
            whc_s = head_w_ref[c_rho + c] * hc
            em = jnp.exp((-0.5 * head_inv2_ref[c]) * dg2)
            es = jnp.exp((-0.5 * head_inv2_ref[c_rho + c]) * dg2)
            acc_m = acc_m + em * whc_m
            acc_s = acc_s + es * whc_s
        mean = jnp.sum(acc_m, axis=1, keepdims=True) + head_b_ref[0]   # (n_tgt, 1)
        sig = jax.nn.softplus(
            jnp.sum(acc_s, axis=1, keepdims=True) + head_b_ref[1])
        mean_ref[0] = mean.astype(mean_ref.dtype)
        sigma_ref[0] = sig.astype(sigma_ref.dtype)

    return kernel


# ---------------------------------------------------------------------------
# Parameter preparation (kernel-friendly layouts)
# ---------------------------------------------------------------------------
def _prepare_kernel_params(params):
    l0 = params["l0"]
    inv2_l0 = (1.0 / jnp.exp(l0["sigma"]) ** 2).astype(jnp.float32)        # (2,)
    w0 = l0["w"].astype(jnp.float32)                                        # (C0, 2)
    b0 = l0["b"].reshape(-1, 1).astype(jnp.float32)                         # (C0, 1)

    conv_flat = []
    for layer in params["conv"]:
        w = layer["w"].astype(jnp.float32)                                  # (Cout, Cin, K)
        cout, cin, k = w.shape
        # rows ordered (k, cin): W2[co, k*cin + ci] = w[co, ci, k]
        w2 = jnp.transpose(w, (0, 2, 1)).reshape(cout, k * cin)
        conv_flat += [w2, layer["b"].reshape(cout, 1).astype(jnp.float32)]

    head_inv2 = jnp.concatenate(
        [1.0 / jnp.exp(params["mean"]["sigma"]) ** 2,
         1.0 / jnp.exp(params["sigma"]["sigma"]) ** 2]).astype(jnp.float32)
    head_w = jnp.concatenate(
        [params["mean"]["w"].reshape(-1),
         params["sigma"]["w"].reshape(-1)]).astype(jnp.float32)
    head_b = jnp.concatenate(
        [params["mean"]["b"].reshape(-1),
         params["sigma"]["b"].reshape(-1)]).astype(jnp.float32)             # (2,)
    return inv2_l0, head_inv2, head_w, head_b, w0, b0, conv_flat


# ---------------------------------------------------------------------------
# Fused forward on a fixed (already padded) grid — single pallas_call
# ---------------------------------------------------------------------------
@jax.jit
def _convcnp_on_grid(params, x, y, x_out, x_grid_padded):
    B, n_ctx, _ = x.shape
    n_tgt = x_out.shape[1]
    n_layers = len(params["conv"])
    ksize = params["conv"][0]["w"].shape[2]
    side = ((ksize - 1) // 2) * n_layers
    W0 = x_grid_padded.shape[1]
    num_points = W0 - 2 * side

    inv2_l0, head_inv2, head_w, head_b, w0, b0, conv_flat = \
        _prepare_kernel_params(params)

    kernel = _make_convcnp_kernel(num_points, n_layers, ksize)

    def smem():
        return pl.BlockSpec(memory_space=pltpu.MemorySpace.SMEM)

    def rep(shape):  # replicated (whole-array) VMEM block
        return pl.BlockSpec(shape, lambda b: (0,) * len(shape))

    conv_specs = []
    for i in range(n_layers):
        conv_specs.append(rep(conv_flat[2 * i].shape))
        conv_specs.append(rep(conv_flat[2 * i + 1].shape))

    mean, sigma = pl.pallas_call(
        kernel,
        out_shape=(jax.ShapeDtypeStruct((B, n_tgt, 1), jnp.float32),
                   jax.ShapeDtypeStruct((B, n_tgt, 1), jnp.float32)),
        grid_spec=pltpu.PrefetchScalarGridSpec(
            num_scalar_prefetch=0,
            grid=(B,),
            in_specs=[
                smem(), smem(), smem(), smem(),
                pl.BlockSpec((1, n_ctx, 1), lambda b: (b, 0, 0)),   # x
                pl.BlockSpec((1, n_ctx, 1), lambda b: (b, 0, 0)),   # y
                pl.BlockSpec((1, W0), lambda b: (0, 0)),            # padded grid row
                pl.BlockSpec((1, n_tgt, 1), lambda b: (b, 0, 0)),   # x_out
                rep(w0.shape),
                rep(b0.shape),
                *conv_specs,
            ],
            out_specs=[
                pl.BlockSpec((1, n_tgt, 1), lambda b: (b, 0, 0)),
                pl.BlockSpec((1, n_tgt, 1), lambda b: (b, 0, 0)),
            ],
        ),
        compiler_params=pltpu.CompilerParams(
            dimension_semantics=("parallel",)),
    )(inv2_l0, head_inv2, head_w, head_b,
      x.astype(jnp.float32), y.astype(jnp.float32),
      x_grid_padded.astype(jnp.float32), x_out.astype(jnp.float32),
      w0, b0, *conv_flat)
    return mean, sigma


# ---------------------------------------------------------------------------
# ConvCNP forward (host side only computes the data-dependent grid extent,
# exactly like the PyTorch reference's .cpu().numpy())
# ---------------------------------------------------------------------------
def convcnp_forward(params, x, y, x_out, points_per_unit, multiplier):
    """x: (B,n,1), y: (B,n,1), x_out: (B,m,1) -> (mean, sigma) each (B,m,1)."""
    n_layers = len(params["conv"])
    ksize = params["conv"][0]["w"].shape[2]
    side = ((ksize - 1) // 2) * n_layers

    # Data-dependent grid extent (single device->host sync, mirrors reference).
    x_min = min(float(jnp.min(x)), float(jnp.min(x_out)), -2.0) - 0.1
    x_max = max(float(jnp.max(x)), float(jnp.max(x_out)), 2.0) + 0.1
    num_points = int(to_multiple(points_per_unit * (x_max - x_min), multiplier))
    x_grid = jnp.linspace(x_min, x_max, num_points).astype(jnp.float32)
    # Pre-pad with `side` edge columns per side; the rho CNN consumes `pad`
    # columns per layer so the representation stays aligned with the real grid
    # and the conv zero padding is handled by in-kernel masking.
    x_grid_padded = jnp.pad(x_grid, (side, side), mode="edge").reshape(1, -1)

    return _convcnp_on_grid(params, x, y, x_out, x_grid_padded)


# ---------------------------------------------------------------------------
# Parameter init (deterministic; PyTorch layout conventions:
#   Linear weight (out, in), Conv1d weight (out, in, K))
# ---------------------------------------------------------------------------
def _xavier_normal(key, shape):
    fan_out, fan_in = shape[0], shape[1]
    std = math.sqrt(2.0 / (fan_in + fan_out))
    return (std * jax.random.normal(key, shape)).astype(jnp.float32)


def init_convcnp_params(key, points_per_unit, conv_in=8, conv_out=8):
    init_length_scale = 2.0 / points_per_unit
    keys = jax.random.split(key, 8)
    params = {}

    # l0: ConvDeepSet(in=1, out=conv_in, use_density=True) -> in_channels = 2
    params["l0"] = {
        "sigma": jnp.full((2,), math.log(init_length_scale), jnp.float32),
        "w": _xavier_normal(keys[0], (conv_in, 2)),
        "b": jnp.zeros((conv_in,), jnp.float32),
    }

    # rho: SimpleConv-style CNN (8->16->32->16->8), kernel 5, 'same', ReLU between
    chans = [conv_in, 16, 32, 16, conv_out]
    convs = []
    for i in range(len(chans) - 1):
        cin, cout = chans[i], chans[i + 1]
        std = math.sqrt(2.0 / (KERNEL_SIZE * cin + cout))
        w = (std * jax.random.normal(
            keys[1 + i], (cout, cin, KERNEL_SIZE))).astype(jnp.float32)
        convs.append({"w": w, "b": jnp.zeros((cout,), jnp.float32)})
    params["conv"] = convs

    # mean / sigma heads: ConvDeepSet(in=conv_out, out=1, use_density=False)
    for idx, name in enumerate(["mean", "sigma"]):
        params[name] = {
            "sigma": jnp.full((conv_out,), math.log(init_length_scale), jnp.float32),
            "w": _xavier_normal(keys[5 + idx], (1, conv_out)),
            "b": jnp.zeros((1,), jnp.float32),
        }
    return params


if __name__ == "__main__":
    key = jax.random.PRNGKey(0)
    k1, k2, k3, kp = jax.random.split(key, 4)

    B, n_ctx, n_tgt = 2, 8, 10
    points_per_unit = 32
    num_halving_layers = 0            # SimpleConv-style architecture
    multiplier = 2 ** num_halving_layers

    x = jax.random.uniform(k1, (B, n_ctx, 1), jnp.float32, -1.8, 1.8)
    y = jax.random.normal(k2, (B, n_ctx, 1), dtype=jnp.float32)
    x_out = jax.random.uniform(k3, (B, n_tgt, 1), jnp.float32, -1.8, 1.8)

    params = init_convcnp_params(kp, points_per_unit)
    mean, sigma = convcnp_forward(params, x, y, x_out, points_per_unit, multiplier)
    jax.block_until_ready((mean, sigma))

    assert mean.shape == (B, n_tgt, 1), mean.shape
    assert sigma.shape == (B, n_tgt, 1), sigma.shape
    assert bool(jnp.all(sigma > 0.0))
    assert bool(jnp.all(jnp.isfinite(mean))) and bool(jnp.all(jnp.isfinite(sigma)))
    print("KERNEL_OK")
</pallas_src>

<mosaic_0001>
module attributes {stable_mosaic.version = 11 : i64} {
  func.func @kernel(%arg0: i32, %arg1: memref<2xf32, #tpu.memory_space<smem>>, %arg2: memref<16xf32, #tpu.memory_space<smem>>, %arg3: memref<16xf32, #tpu.memory_space<smem>>, %arg4: memref<2xf32, #tpu.memory_space<smem>>, %arg5: memref<1x8x1xf32, #tpu.memory_space<vmem>>, %arg6: memref<1x8x1xf32, #tpu.memory_space<vmem>>, %arg7: memref<1x151xf32, #tpu.memory_space<vmem>>, %arg8: memref<1x10x1xf32, #tpu.memory_space<vmem>>, %arg9: memref<8x2xf32, #tpu.memory_space<vmem>>, %arg10: memref<8x1xf32, #tpu.memory_space<vmem>>, %arg11: memref<16x40xf32, #tpu.memory_space<vmem>>, %arg12: memref<16x1xf32, #tpu.memory_space<vmem>>, %arg13: memref<32x80xf32, #tpu.memory_space<vmem>>, %arg14: memref<32x1xf32, #tpu.memory_space<vmem>>, %arg15: memref<16x160xf32, #tpu.memory_space<vmem>>, %arg16: memref<16x1xf32, #tpu.memory_space<vmem>>, %arg17: memref<8x80xf32, #tpu.memory_space<vmem>>, %arg18: memref<8x1xf32, #tpu.memory_space<vmem>>, %arg19: memref<1x10x1xf32, #tpu.memory_space<vmem>>, %arg20: memref<1x10x1xf32, #tpu.memory_space<vmem>>) attributes {dimension_semantics = [#tpu.dimension_semantics<parallel>], iteration_bounds = array<i64: 2>, scalar_prefetch = 0 : i64, scratch_operands = 0 : i64, tpu.core_type = #tpu.core_type<tc>, window_params = [{transform_indices = @transform_0, window_bounds = array<i64: 2>}, {transform_indices = @transform_1, window_bounds = array<i64: 16>}, {transform_indices = @transform_2, window_bounds = array<i64: 16>}, {transform_indices = @transform_3, window_bounds = array<i64: 2>}, {transform_indices = @transform_4, window_bounds = array<i64: 1, 8, 1>}, {transform_indices = @transform_5, window_bounds = array<i64: 1, 8, 1>}, {pipeline_mode = #tpu.pipeline_mode<synchronous>, transform_indices = @transform_6, window_bounds = array<i64: 1, 151>}, {transform_indices = @transform_7, window_bounds = array<i64: 1, 10, 1>}, {pipeline_mode = #tpu.pipeline_mode<synchronous>, transform_indices = @transform_8, window_bounds = array<i64: 8, 2>}, {pipeline_mode = #tpu.pipeline_mode<synchronous>, transform_indices = @transform_9, window_bounds = array<i64: 8, 1>}, {pipeline_mode = #tpu.pipeline_mode<synchronous>, transform_indices = @transform_10, window_bounds = array<i64: 16, 40>}, {pipeline_mode = #tpu.pipeline_mode<synchronous>, transform_indices = @transform_11, window_bounds = array<i64: 16, 1>}, {pipeline_mode = #tpu.pipeline_mode<synchronous>, transform_indices = @transform_12, window_bounds = array<i64: 32, 80>}, {pipeline_mode = #tpu.pipeline_mode<synchronous>, transform_indices = @transform_13, window_bounds = array<i64: 32, 1>}, {pipeline_mode = #tpu.pipeline_mode<synchronous>, transform_indices = @transform_14, window_bounds = array<i64: 16, 160>}, {pipeline_mode = #tpu.pipeline_mode<synchronous>, transform_indices = @transform_15, window_bounds = array<i64: 16, 1>}, {pipeline_mode = #tpu.pipeline_mode<synchronous>, transform_indices = @transform_16, window_bounds = array<i64: 8, 80>}, {pipeline_mode = #tpu.pipeline_mode<synchronous>, transform_indices = @transform_17, window_bounds = array<i64: 8, 1>}, {transform_indices = @transform_18, window_bounds = array<i64: 1, 10, 1>}, {transform_indices = @transform_19, window_bounds = array<i64: 1, 10, 1>}]} {
    %c0 = arith.constant 0 : index
    %c0_0 = arith.constant 0 : index
    %0 = vector.load %arg7[%c0, %c0_0] : memref<1x151xf32, #tpu.memory_space<vmem>>, vector<1x151xf32>
    %c0_1 = arith.constant 0 : index
    %c0_2 = arith.constant 0 : index
    %c0_3 = arith.constant 0 : index
    %1 = vector.load %arg5[%c0_1, %c0_2, %c0_3] : memref<1x8x1xf32, #tpu.memory_space<vmem>>, vector<1x8x1xf32>
    %2 = vector.shape_cast %1 : vector<1x8x1xf32> to vector<8x1xf32>
    %c0_4 = arith.constant 0 : index
    %c0_5 = arith.constant 0 : index
    %c0_6 = arith.constant 0 : index
    %3 = vector.load %arg6[%c0_4, %c0_5, %c0_6] : memref<1x8x1xf32, #tpu.memory_space<vmem>>, vector<1x8x1xf32>
    %4 = vector.shape_cast %3 : vector<1x8x1xf32> to vector<8x1xf32>
    %5 = vector.broadcast %0 : vector<1x151xf32> to vector<8x151xf32>
    %6 = vector.broadcast %2 : vector<8x1xf32> to vector<8x151xf32>
    %7 = arith.subf %5, %6 : vector<8x151xf32>
    %8 = arith.mulf %7, %7 : vector<8x151xf32>
    %c0_7 = arith.constant 0 : index
    %9 = memref.load %arg1[%c0_7] : memref<2xf32, #tpu.memory_space<smem>>
    %cst = arith.constant -5.000000e-01 : f32
    %10 = arith.mulf %cst, %9 : f32
    %11 = vector.broadcast %10 : f32 to vector<8x151xf32>
    %12 = arith.mulf %11, %8 : vector<8x151xf32>
    %13 = math.exp %12 : vector<8x151xf32>
    %c1 = arith.constant 1 : index
    %14 = memref.load %arg1[%c1] : memref<2xf32, #tpu.memory_space<smem>>
    %cst_8 = arith.constant -5.000000e-01 : f32
    %15 = arith.mulf %cst_8, %14 : f32
    %16 = vector.broadcast %15 : f32 to vector<8x151xf32>
    %17 = arith.mulf %16, %8 : vector<8x151xf32>
    %18 = math.exp %17 : vector<8x151xf32>
    %cst_9 = arith.constant dense<0.000000e+00> : vector<151xf32>
    %19 = vector.multi_reduction <add>, %13, %cst_9 [0] : vector<8x151xf32> to vector<151xf32>
    %20 = vector.shape_cast %19 : vector<151xf32> to vector<1x151xf32>
    %21 = vector.broadcast %4 : vector<8x1xf32> to vector<8x151xf32>
    %22 = arith.mulf %18, %21 : vector<8x151xf32>
    %cst_10 = arith.constant dense<0.000000e+00> : vector<151xf32>
    %23 = vector.multi_reduction <add>, %22, %cst_10 [0] : vector<8x151xf32> to vector<151xf32>
    %24 = vector.shape_cast %23 : vector<151xf32> to vector<1x151xf32>
    %cst_11 = arith.constant 9.99999993E-9 : f32
    %25 = vector.broadcast %cst_11 : f32 to vector<1x151xf32>
    %26 = arith.addf %20, %25 : vector<1x151xf32>
    %27 = arith.divf %24, %26 : vector<1x151xf32>
    %c0_12 = arith.constant 0 : index
    %c0_13 = arith.constant 0 : index
    %28 = vector.load %arg9[%c0_12, %c0_13] : memref<8x2xf32, #tpu.memory_space<vmem>>, vector<8x1xf32>
    %29 = vector.broadcast %28 : vector<8x1xf32> to vector<8x151xf32>
    %30 = vector.broadcast %20 : vector<1x151xf32> to vector<8x151xf32>
    %31 = arith.mulf %29, %30 : vector<8x151xf32>
    %c0_14 = arith.constant 0 : index
    %c1_15 = arith.constant 1 : index
    %32 = vector.load %arg9[%c0_14, %c1_15] : memref<8x2xf32, #tpu.memory_space<vmem>>, vector<8x1xf32>
    %33 = vector.broadcast %32 : vector<8x1xf32> to vector<8x151xf32>
    %34 = vector.broadcast %27 : vector<1x151xf32> to vector<8x151xf32>
    %35 = arith.mulf %33, %34 : vector<8x151xf32>
    %36 = arith.addf %31, %35 : vector<8x151xf32>
    %c0_16 = arith.constant 0 : index
    %c0_17 = arith.constant 0 : index
    %37 = vector.load %arg10[%c0_16, %c0_17] : memref<8x1xf32, #tpu.memory_space<vmem>>, vector<8x1xf32>
    %38 = vector.broadcast %37 : vector<8x1xf32> to vector<8x151xf32>
    %39 = arith.addf %36, %38 : vector<8x151xf32>
    %40 = arith.negf %39 : vector<8x151xf32>
    %41 = math.exp %40 : vector<8x151xf32>
    %cst_18 = arith.constant 1.000000e+00 : f32
    %42 = vector.broadcast %cst_18 : f32 to vector<8x151xf32>
    %43 = arith.addf %42, %41 : vector<8x151xf32>
    %44 = arith.divf %42, %43 : vector<8x151xf32>
    %45 = tpu.iota {dimensions = array<i32: 1>} : vector<1x151xi32>
    %c8_i32 = arith.constant 8 : i32
    %46 = vector.broadcast %c8_i32 : i32 to vector<1x151xi32>
    %47 = arith.cmpi sge, %45, %46 : vector<1x151xi32>
    %c143_i32 = arith.constant 143 : i32
    %48 = vector.broadcast %c143_i32 : i32 to vector<1x151xi32>
    %49 = arith.cmpi slt, %45, %48 : vector<1x151xi32>
    %50 = arith.andi %47, %49 : vector<1x151xi1>
    %cst_19 = arith.constant 0.000000e+00 : f32
    %51 = vector.shape_cast %50 : vector<1x151xi1> to vector<1x151xi1>
    %52 = vector.broadcast %51 : vector<1x151xi1> to vector<8x151xi1>
    %53 = vector.broadcast %cst_19 : f32 to vector<8x151xf32>
    %54 = arith.select %52, %44, %53 : vector<8x151xi1>, vector<8x151xf32>
    %55 = vector.extract_strided_slice %54 {offsets = [0, 0], sizes = [8, 147], strides = [1, 1]} : vector<8x151xf32> to vector<8x147xf32>
    %56 = vector.extract_strided_slice %54 {offsets = [0, 1], sizes = [8, 147], strides = [1, 1]} : vector<8x151xf32> to vector<8x147xf32>
    %57 = vector.extract_strided_slice %54 {offsets = [0, 2], sizes = [8, 147], strides = [1, 1]} : vector<8x151xf32> to vector<8x147xf32>
    %58 = vector.extract_strided_slice %54 {offsets = [0, 3], sizes = [8, 147], strides = [1, 1]} : vector<8x151xf32> to vector<8x147xf32>
    %59 = vector.extract_strided_slice %54 {offsets = [0, 4], sizes = [8, 147], strides = [1, 1]} : vector<8x151xf32> to vector<8x147xf32>
    %60 = tpu.concatenate %55, %56, %57, %58, %59 in 0 : vector<8x147xf32>, vector<8x147xf32>, vector<8x147xf32>, vector<8x147xf32>, vector<8x147xf32> -> vector<40x147xf32>
    %c0_20 = arith.constant 0 : index
    %c0_21 = arith.constant 0 : index
    %61 = vector.load %arg11[%c0_20, %c0_21] : memref<16x40xf32, #tpu.memory_space<vmem>>, vector<16x40xf32>
    %cst_22 = arith.constant dense<0.000000e+00> : vector<16x147xf32>
    %62 = tpu.matmul %61, %60, %cst_22 {dimension_numbers = #tpu.dot_dimension_numbers<[1], [0], [0], [1], [0, 0, 1, 1], [], []>} : vector<16x40xf32>, vector<40x147xf32>, vector<16x147xf32> -> vector<16x147xf32>
    %c0_23 = arith.constant 0 : index
    %c0_24 = arith.constant 0 : index
    %63 = vector.load %arg12[%c0_23, %c0_24] : memref<16x1xf32, #tpu.memory_space<vmem>>, vector<16x1xf32>
    %64 = vector.broadcast %63 : vector<16x1xf32> to vector<16x147xf32>
    %65 = arith.addf %62, %64 : vector<16x147xf32>
    %cst_25 = arith.constant 0.000000e+00 : f32
    %66 = vector.broadcast %cst_25 : f32 to vector<16x147xf32>
    %67 = arith.maximumf %65, %66 : vector<16x147xf32>
    %68 = tpu.iota {dimensions = array<i32: 1>} : vector<1x147xi32>
    %c6_i32 = arith.constant 6 : i32
    %69 = vector.broadcast %c6_i32 : i32 to vector<1x147xi32>
    %70 = arith.cmpi sge, %68, %69 : vector<1x147xi32>
    %c141_i32 = arith.constant 141 : i32
    %71 = vector.broadcast %c141_i32 : i32 to vector<1x147xi32>
    %72 = arith.cmpi slt, %68, %71 : vector<1x147xi32>
    %73 = arith.andi %70, %72 : vector<1x147xi1>
    %cst_26 = arith.constant 0.000000e+00 : f32
    %74 = vector.shape_cast %73 : vector<1x147xi1> to vector<1x147xi1>
    %75 = vector.broadcast %74 : vector<1x147xi1> to vector<16x147xi1>
    %76 = vector.broadcast %cst_26 : f32 to vector<16x147xf32>
    %77 = arith.select %75, %67, %76 : vector<16x147xi1>, vector<16x147xf32>
    %78 = vector.extract_strided_slice %77 {offsets = [0, 0], sizes = [16, 143], strides = [1, 1]} : vector<16x147xf32> to vector<16x143xf32>
    %79 = vector.extract_strided_slice %77 {offsets = [0, 1], sizes = [16, 143], strides = [1, 1]} : vector<16x147xf32> to vector<16x143xf32>
    %80 = vector.extract_strided_slice %77 {offsets = [0, 2], sizes = [16, 143], strides = [1, 1]} : vector<16x147xf32> to vector<16x143xf32>
    %81 = vector.extract_strided_slice %77 {offsets = [0, 3], sizes = [16, 143], strides = [1, 1]} : vector<16x147xf32> to vector<16x143xf32>
    %82 = vector.extract_strided_slice %77 {offsets = [0, 4], sizes = [16, 143], strides = [1, 1]} : vector<16x147xf32> to vector<16x143xf32>
    %83 = tpu.concatenate %78, %79, %80, %81, %82 in 0 : vector<16x143xf32>, vector<16x143xf32>, vector<16x143xf32>, vector<16x143xf32>, vector<16x143xf32> -> vector<80x143xf32>
    %c0_27 = arith.constant 0 : index
    %c0_28 = arith.constant 0 : index
    %84 = vector.load %arg13[%c0_27, %c0_28] : memref<32x80xf32, #tpu.memory_space<vmem>>, vector<32x80xf32>
    %cst_29 = arith.constant dense<0.000000e+00> : vector<32x143xf32>
    %85 = tpu.matmul %84, %83, %cst_29 {dimension_numbers = #tpu.dot_dimension_numbers<[1], [0], [0], [1], [0, 0, 1, 1], [], []>} : vector<32x80xf32>, vector<80x143xf32>, vector<32x143xf32> -> vector<32x143xf32>
    %c0_30 = arith.constant 0 : index
    %c0_31 = arith.constant 0 : index
    %86 = vector.load %arg14[%c0_30, %c0_31] : memref<32x1xf32, #tpu.memory_space<vmem>>, vector<32x1xf32>
    %87 = vector.broadcast %86 : vector<32x1xf32> to vector<32x143xf32>
    %88 = arith.addf %85, %87 : vector<32x143xf32>
    %cst_32 = arith.constant 0.000000e+00 : f32
    %89 = vector.broadcast %cst_32 : f32 to vector<32x143xf32>
    %90 = arith.maximumf %88, %89 : vector<32x143xf32>
    %91 = tpu.iota {dimensions = array<i32: 1>} : vector<1x143xi32>
    %c4_i32 = arith.constant 4 : i32
    %92 = vector.broadcast %c4_i32 : i32 to vector<1x143xi32>
    %93 = arith.cmpi sge, %91, %92 : vector<1x143xi32>
    %c139_i32 = arith.constant 139 : i32
    %94 = vector.broadcast %c139_i32 : i32 to vector<1x143xi32>
    %95 = arith.cmpi slt, %91, %94 : vector<1x143xi32>
    %96 = arith.andi %93, %95 : vector<1x143xi1>
    %cst_33 = arith.constant 0.000000e+00 : f32
    %97 = vector.shape_cast %96 : vector<1x143xi1> to vector<1x143xi1>
    %98 = vector.broadcast %97 : vector<1x143xi1> to vector<32x143xi1>
    %99 = vector.broadcast %cst_33 : f32 to vector<32x143xf32>
    %100 = arith.select %98, %90, %99 : vector<32x143xi1>, vector<32x143xf32>
    %101 = vector.extract_strided_slice %100 {offsets = [0, 0], sizes = [32, 139], strides = [1, 1]} : vector<32x143xf32> to vector<32x139xf32>
    %102 = vector.extract_strided_slice %100 {offsets = [0, 1], sizes = [32, 139], strides = [1, 1]} : vector<32x143xf32> to vector<32x139xf32>
    %103 = vector.extract_strided_slice %100 {offsets = [0, 2], sizes = [32, 139], strides = [1, 1]} : vector<32x143xf32> to vector<32x139xf32>
    %104 = vector.extract_strided_slice %100 {offsets = [0, 3], sizes = [32, 139], strides = [1, 1]} : vector<32x143xf32> to vector<32x139xf32>
    %105 = vector.extract_strided_slice %100 {offsets = [0, 4], sizes = [32, 139], strides = [1, 1]} : vector<32x143xf32> to vector<32x139xf32>
    %106 = tpu.concatenate %101, %102, %103, %104, %105 in 0 : vector<32x139xf32>, vector<32x139xf32>, vector<32x139xf32>, vector<32x139xf32>, vector<32x139xf32> -> vector<160x139xf32>
    %c0_34 = arith.constant 0 : index
    %c0_35 = arith.constant 0 : index
    %107 = vector.load %arg15[%c0_34, %c0_35] : memref<16x160xf32, #tpu.memory_space<vmem>>, vector<16x160xf32>
    %cst_36 = arith.constant dense<0.000000e+00> : vector<16x139xf32>
    %108 = tpu.matmul %107, %106, %cst_36 {dimension_numbers = #tpu.dot_dimension_numbers<[1], [0], [0], [1], [0, 0, 1, 1], [], []>} : vector<16x160xf32>, vector<160x139xf32>, vector<16x139xf32> -> vector<16x139xf32>
    %c0_37 = arith.constant 0 : index
    %c0_38 = arith.constant 0 : index
    %109 = vector.load %arg16[%c0_37, %c0_38] : memref<16x1xf32, #tpu.memory_space<vmem>>, vector<16x1xf32>
    %110 = vector.broadcast %109 : vector<16x1xf32> to vector<16x139xf32>
    %111 = arith.addf %108, %110 : vector<16x139xf32>
    %cst_39 = arith.constant 0.000000e+00 : f32
    %112 = vector.broadcast %cst_39 : f32 to vector<16x139xf32>
    %113 = arith.maximumf %111, %112 : vector<16x139xf32>
    %114 = tpu.iota {dimensions = array<i32: 1>} : vector<1x139xi32>
    %c2_i32 = arith.constant 2 : i32
    %115 = vector.broadcast %c2_i32 : i32 to vector<1x139xi32>
    %116 = arith.cmpi sge, %114, %115 : vector<1x139xi32>
    %c137_i32 = arith.constant 137 : i32
    %117 = vector.broadcast %c137_i32 : i32 to vector<1x139xi32>
    %118 = arith.cmpi slt, %114, %117 : vector<1x139xi32>
    %119 = arith.andi %116, %118 : vector<1x139xi1>
    %cst_40 = arith.constant 0.000000e+00 : f32
    %120 = vector.shape_cast %119 : vector<1x139xi1> to vector<1x139xi1>
    %121 = vector.broadcast %120 : vector<1x139xi1> to vector<16x139xi1>
    %122 = vector.broadcast %cst_40 : f32 to vector<16x139xf32>
    %123 = arith.select %121, %113, %122 : vector<16x139xi1>, vector<16x139xf32>
    %124 = vector.extract_strided_slice %123 {offsets = [0, 0], sizes = [16, 135], strides = [1, 1]} : vector<16x139xf32> to vector<16x135xf32>
    %125 = vector.extract_strided_slice %123 {offsets = [0, 1], sizes = [16, 135], strides = [1, 1]} : vector<16x139xf32> to vector<16x135xf32>
    %126 = vector.extract_strided_slice %123 {offsets = [0, 2], sizes = [16, 135], strides = [1, 1]} : vector<16x139xf32> to vector<16x135xf32>
    %127 = vector.extract_strided_slice %123 {offsets = [0, 3], sizes = [16, 135], strides = [1, 1]} : vector<16x139xf32> to vector<16x135xf32>
    %128 = vector.extract_strided_slice %123 {offsets = [0, 4], sizes = [16, 135], strides = [1, 1]} : vector<16x139xf32> to vector<16x135xf32>
    %129 = tpu.concatenate %124, %125, %126, %127, %128 in 0 : vector<16x135xf32>, vector<16x135xf32>, vector<16x135xf32>, vector<16x135xf32>, vector<16x135xf32> -> vector<80x135xf32>
    %c0_41 = arith.constant 0 : index
    %c0_42 = arith.constant 0 : index
    %130 = vector.load %arg17[%c0_41, %c0_42] : memref<8x80xf32, #tpu.memory_space<vmem>>, vector<8x80xf32>
    %cst_43 = arith.constant dense<0.000000e+00> : vector<8x135xf32>
    %131 = tpu.matmul %130, %129, %cst_43 {dimension_numbers = #tpu.dot_dimension_numbers<[1], [0], [0], [1], [0, 0, 1, 1], [], []>} : vector<8x80xf32>, vector<80x135xf32>, vector<8x135xf32> -> vector<8x135xf32>
    %c0_44 = arith.constant 0 : index
    %c0_45 = arith.constant 0 : index
    %132 = vector.load %arg18[%c0_44, %c0_45] : memref<8x1xf32, #tpu.memory_space<vmem>>, vector<8x1xf32>
    %133 = vector.broadcast %132 : vector<8x1xf32> to vector<8x135xf32>
    %134 = arith.addf %131, %133 : vector<8x135xf32>
    %135 = vector.extract_strided_slice %0 {offsets = [0, 8], sizes = [1, 135], strides = [1, 1]} : vector<1x151xf32> to vector<1x135xf32>
    %c0_46 = arith.constant 0 : index
    %c0_47 = arith.constant 0 : index
    %c0_48 = arith.constant 0 : index
    %136 = vector.load %arg8[%c0_46, %c0_47, %c0_48] : memref<1x10x1xf32, #tpu.memory_space<vmem>>, vector<1x10x1xf32>
    %137 = vector.shape_cast %136 : vector<1x10x1xf32> to vector<10x1xf32>
    %138 = vector.broadcast %137 : vector<10x1xf32> to vector<10x135xf32>
    %139 = vector.broadcast %135 : vector<1x135xf32> to vector<10x135xf32>
    %140 = arith.subf %138, %139 : vector<10x135xf32>
    %141 = arith.mulf %140, %140 : vector<10x135xf32>
    %cst_49 = arith.constant 0.000000e+00 : f32
    %142 = vector.broadcast %cst_49 : f32 to vector<10x135xf32>
    %cst_50 = arith.constant 0.000000e+00 : f32
    %143 = vector.broadcast %cst_50 : f32 to vector<10x135xf32>
    %144 = vector.extract_strided_slice %134 {offsets = [0, 0], sizes = [1, 135], strides = [1, 1]} : vector<8x135xf32> to vector<1x135xf32>
    %c0_51 = arith.constant 0 : index
    %145 = memref.load %arg3[%c0_51] : memref<16xf32, #tpu.memory_space<smem>>
    %146 = vector.broadcast %145 : f32 to vector<1x135xf32>
    %147 = arith.mulf %146, %144 : vector<1x135xf32>
    %c8 = arith.constant 8 : index
    %148 = memref.load %arg3[%c8] : memref<16xf32, #tpu.memory_space<smem>>
    %149 = vector.broadcast %148 : f32 to vector<1x135xf32>
    %150 = arith.mulf %149, %144 : vector<1x135xf32>
    %c0_52 = arith.constant 0 : index
    %151 = memref.load %arg2[%c0_52] : memref<16xf32, #tpu.memory_space<smem>>
    %cst_53 = arith.constant -5.000000e-01 : f32
    %152 = arith.mulf %cst_53, %151 : f32
    %153 = vector.broadcast %152 : f32 to vector<10x135xf32>
    %154 = arith.mulf %153, %141 : vector<10x135xf32>
    %155 = math.exp %154 : vector<10x135xf32>
    %c8_54 = arith.constant 8 : index
    %156 = memref.load %arg2[%c8_54] : memref<16xf32, #tpu.memory_space<smem>>
    %cst_55 = arith.constant -5.000000e-01 : f32
    %157 = arith.mulf %cst_55, %156 : f32
    %158 = vector.broadcast %157 : f32 to vector<10x135xf32>
    %159 = arith.mulf %158, %141 : vector<10x135xf32>
    %160 = math.exp %159 : vector<10x135xf32>
    %161 = vector.broadcast %147 : vector<1x135xf32> to vector<10x135xf32>
    %162 = arith.mulf %155, %161 : vector<10x135xf32>
    %163 = arith.addf %142, %162 : vector<10x135xf32>
    %164 = vector.broadcast %150 : vector<1x135xf32> to vector<10x135xf32>
    %165 = arith.mulf %160, %164 : vector<10x135xf32>
    %166 = arith.addf %143, %165 : vector<10x135xf32>
    %167 = vector.extract_strided_slice %134 {offsets = [1, 0], sizes = [1, 135], strides = [1, 1]} : vector<8x135xf32> to vector<1x135xf32>
    %c1_56 = arith.constant 1 : index
    %168 = memref.load %arg3[%c1_56] : memref<16xf32, #tpu.memory_space<smem>>
    %169 = vector.broadcast %168 : f32 to vector<1x135xf32>
    %170 = arith.mulf %169, %167 : vector<1x135xf32>
    %c9 = arith.constant 9 : index
    %171 = memref.load %arg3[%c9] : memref<16xf32, #tpu.memory_space<smem>>
    %172 = vector.broadcast %171 : f32 to vector<1x135xf32>
    %173 = arith.mulf %172, %167 : vector<1x135xf32>
    %c1_57 = arith.constant 1 : index
    %174 = memref.load %arg2[%c1_57] : memref<16xf32, #tpu.memory_space<smem>>
    %cst_58 = arith.constant -5.000000e-01 : f32
    %175 = arith.mulf %cst_58, %174 : f32
    %176 = vector.broadcast %175 : f32 to vector<10x135xf32>
    %177 = arith.mulf %176, %141 : vector<10x135xf32>
    %178 = math.exp %177 : vector<10x135xf32>
    %c9_59 = arith.constant 9 : index
    %179 = memref.load %arg2[%c9_59] : memref<16xf32, #tpu.memory_space<smem>>
    %cst_60 = arith.constant -5.000000e-01 : f32
    %180 = arith.mulf %cst_60, %179 : f32
    %181 = vector.broadcast %180 : f32 to vector<10x135xf32>
    %182 = arith.mulf %181, %141 : vector<10x135xf32>
    %183 = math.exp %182 : vector<10x135xf32>
    %184 = vector.broadcast %170 : vector<1x135xf32> to vector<10x135xf32>
    %185 = arith.mulf %178, %184 : vector<10x135xf32>
    %186 = arith.addf %163, %185 : vector<10x135xf32>
    %187 = vector.broadcast %173 : vector<1x135xf32> to vector<10x135xf32>
    %188 = arith.mulf %183, %187 : vector<10x135xf32>
    %189 = arith.addf %166, %188 : vector<10x135xf32>
    %190 = vector.extract_strided_slice %134 {offsets = [2, 0], sizes = [1, 135], strides = [1, 1]} : vector<8x135xf32> to vector<1x135xf32>
    %c2 = arith.constant 2 : index
    %191 = memref.load %arg3[%c2] : memref<16xf32, #tpu.memory_space<smem>>
    %192 = vector.broadcast %191 : f32 to vector<1x135xf32>
    %193 = arith.mulf %192, %190 : vector<1x135xf32>
    %c10 = arith.constant 10 : index
    %194 = memref.load %arg3[%c10] : memref<16xf32, #tpu.memory_space<smem>>
    %195 = vector.broadcast %194 : f32 to vector<1x135xf32>
    %196 = arith.mulf %195, %190 : vector<1x135xf32>
    %c2_61 = arith.constant 2 : index
    %197 = memref.load %arg2[%c2_61] : memref<16xf32, #tpu.memory_space<smem>>
    %cst_62 = arith.constant -5.000000e-01 : f32
    %198 = arith.mulf %cst_62, %197 : f32
    %199 = vector.broadcast %198 : f32 to vector<10x135xf32>
    %200 = arith.mulf %199, %141 : vector<10x135xf32>
    %201 = math.exp %200 : vector<10x135xf32>
    %c10_63 = arith.constant 10 : index
    %202 = memref.load %arg2[%c10_63] : memref<16xf32, #tpu.memory_space<smem>>
    %cst_64 = arith.constant -5.000000e-01 : f32
    %203 = arith.mulf %cst_64, %202 : f32
    %204 = vector.broadcast %203 : f32 to vector<10x135xf32>
    %205 = arith.mulf %204, %141 : vector<10x135xf32>
    %206 = math.exp %205 : vector<10x135xf32>
    %207 = vector.broadcast %193 : vector<1x135xf32> to vector<10x135xf32>
    %208 = arith.mulf %201, %207 : vector<10x135xf32>
    %209 = arith.addf %186, %208 : vector<10x135xf32>
    %210 = vector.broadcast %196 : vector<1x135xf32> to vector<10x135xf32>
    %211 = arith.mulf %206, %210 : vector<10x135xf32>
    %212 = arith.addf %189, %211 : vector<10x135xf32>
    %213 = vector.extract_strided_slice %134 {offsets = [3, 0], sizes = [1, 135], strides = [1, 1]} : vector<8x135xf32> to vector<1x135xf32>
    %c3 = arith.constant 3 : index
    %214 = memref.load %arg3[%c3] : memref<16xf32, #tpu.memory_space<smem>>
    %215 = vector.broadcast %214 : f32 to vector<1x135xf32>
    %216 = arith.mulf %215, %213 : vector<1x135xf32>
    %c11 = arith.constant 11 : index
    %217 = memref.load %arg3[%c11] : memref<16xf32, #tpu.memory_space<smem>>
    %218 = vector.broadcast %217 : f32 to vector<1x135xf32>
    %219 = arith.mulf %218, %213 : vector<1x135xf32>
    %c3_65 = arith.constant 3 : index
    %220 = memref.load %arg2[%c3_65] : memref<16xf32, #tpu.memory_space<smem>>
    %cst_66 = arith.constant -5.000000e-01 : f32
    %221 = arith.mulf %cst_66, %220 : f32
    %222 = vector.broadcast %221 : f32 to vector<10x135xf32>
    %223 = arith.mulf %222, %141 : vector<10x135xf32>
    %224 = math.exp %223 : vector<10x135xf32>
    %c11_67 = arith.constant 11 : index
    %225 = memref.load %arg2[%c11_67] : memref<16xf32, #tpu.memory_space<smem>>
    %cst_68 = arith.constant -5.000000e-01 : f32
    %226 = arith.mulf %cst_68, %225 : f32
    %227 = vector.broadcast %226 : f32 to vector<10x135xf32>
    %228 = arith.mulf %227, %141 : vector<10x135xf32>
    %229 = math.exp %228 : vector<10x135xf32>
    %230 = vector.broadcast %216 : vector<1x135xf32> to vector<10x135xf32>
    %231 = arith.mulf %224, %230 : vector<10x135xf32>
    %232 = arith.addf %209, %231 : vector<10x135xf32>
    %233 = vector.broadcast %219 : vector<1x135xf32> to vector<10x135xf32>
    %234 = arith.mulf %229, %233 : vector<10x135xf32>
    %235 = arith.addf %212, %234 : vector<10x135xf32>
    %236 = vector.extract_strided_slice %134 {offsets = [4, 0], sizes = [1, 135], strides = [1, 1]} : vector<8x135xf32> to vector<1x135xf32>
    %c4 = arith.constant 4 : index
    %237 = memref.load %arg3[%c4] : memref<16xf32, #tpu.memory_space<smem>>
    %238 = vector.broadcast %237 : f32 to vector<1x135xf32>
    %239 = arith.mulf %238, %236 : vector<1x135xf32>
    %c12 = arith.constant 12 : index
    %240 = memref.load %arg3[%c12] : memref<16xf32, #tpu.memory_space<smem>>
    %241 = vector.broadcast %240 : f32 to vector<1x135xf32>
    %242 = arith.mulf %241, %236 : vector<1x135xf32>
    %c4_69 = arith.constant 4 : index
    %243 = memref.load %arg2[%c4_69] : memref<16xf32, #tpu.memory_space<smem>>
    %cst_70 = arith.constant -5.000000e-01 : f32
    %244 = arith.mulf %cst_70, %243 : f32
    %245 = vector.broadcast %244 : f32 to vector<10x135xf32>
    %246 = arith.mulf %245, %141 : vector<10x135xf32>
    %247 = math.exp %246 : vector<10x135xf32>
    %c12_71 = arith.constant 12 : index
    %248 = memref.load %arg2[%c12_71] : memref<16xf32, #tpu.memory_space<smem>>
    %cst_72 = arith.constant -5.000000e-01 : f32
    %249 = arith.mulf %cst_72, %248 : f32
    %250 = vector.broadcast %249 : f32 to vector<10x135xf32>
    %251 = arith.mulf %250, %141 : vector<10x135xf32>
    %252 = math.exp %251 : vector<10x135xf32>
    %253 = vector.broadcast %239 : vector<1x135xf32> to vector<10x135xf32>
    %254 = arith.mulf %247, %253 : vector<10x135xf32>
    %255 = arith.addf %232, %254 : vector<10x135xf32>
    %256 = vector.broadcast %242 : vector<1x135xf32> to vector<10x135xf32>
    %257 = arith.mulf %252, %256 : vector<10x135xf32>
    %258 = arith.addf %235, %257 : vector<10x135xf32>
    %259 = vector.extract_strided_slice %134 {offsets = [5, 0], sizes = [1, 135], strides = [1, 1]} : vector<8x135xf32> to vector<1x135xf32>
    %c5 = arith.constant 5 : index
    %260 = memref.load %arg3[%c5] : memref<16xf32, #tpu.memory_space<smem>>
    %261 = vector.broadcast %260 : f32 to vector<1x135xf32>
    %262 = arith.mulf %261, %259 : vector<1x135xf32>
    %c13 = arith.constant 13 : index
    %263 = memref.load %arg3[%c13] : memref<16xf32, #tpu.memory_space<smem>>
    %264 = vector.broadcast %263 : f32 to vector<1x135xf32>
    %265 = arith.mulf %264, %259 : vector<1x135xf32>
    %c5_73 = arith.constant 5 : index
    %266 = memref.load %arg2[%c5_73] : memref<16xf32, #tpu.memory_space<smem>>
    %cst_74 = arith.constant -5.000000e-01 : f32
    %267 = arith.mulf %cst_74, %266 : f32
    %268 = vector.broadcast %267 : f32 to vector<10x135xf32>
    %269 = arith.mulf %268, %141 : vector<10x135xf32>
    %270 = math.exp %269 : vector<10x135xf32>
    %c13_75 = arith.constant 13 : index
    %271 = memref.load %arg2[%c13_75] : memref<16xf32, #tpu.memory_space<smem>>
    %cst_76 = arith.constant -5.000000e-01 : f32
    %272 = arith.mulf %cst_76, %271 : f32
    %273 = vector.broadcast %272 : f32 to vector<10x135xf32>
    %274 = arith.mulf %273, %141 : vector<10x135xf32>
    %275 = math.exp %274 : vector<10x135xf32>
    %276 = vector.broadcast %262 : vector<1x135xf32> to vector<10x135xf32>
    %277 = arith.mulf %270, %276 : vector<10x135xf32>
    %278 = arith.addf %255, %277 : vector<10x135xf32>
    %279 = vector.broadcast %265 : vector<1x135xf32> to vector<10x135xf32>
    %280 = arith.mulf %275, %279 : vector<10x135xf32>
    %281 = arith.addf %258, %280 : vector<10x135xf32>
    %282 = vector.extract_strided_slice %134 {offsets = [6, 0], sizes = [1, 135], strides = [1, 1]} : vector<8x135xf32> to vector<1x135xf32>
    %c6 = arith.constant 6 : index
    %283 = memref.load %arg3[%c6] : memref<16xf32, #tpu.memory_space<smem>>
    %284 = vector.broadcast %283 : f32 to vector<1x135xf32>
    %285 = arith.mulf %284, %282 : vector<1x135xf32>
    %c14 = arith.constant 14 : index
    %286 = memref.load %arg3[%c14] : memref<16xf32, #tpu.memory_space<smem>>
    %287 = vector.broadcast %286 : f32 to vector<1x135xf32>
    %288 = arith.mulf %287, %282 : vector<1x135xf32>
    %c6_77 = arith.constant 6 : index
    %289 = memref.load %arg2[%c6_77] : memref<16xf32, #tpu.memory_space<smem>>
    %cst_78 = arith.constant -5.000000e-01 : f32
    %290 = arith.mulf %cst_78, %289 : f32
    %291 = vector.broadcast %290 : f32 to vector<10x135xf32>
    %292 = arith.mulf %291, %141 : vector<10x135xf32>
    %293 = math.exp %292 : vector<10x135xf32>
    %c14_79 = arith.constant 14 : index
    %294 = memref.load %arg2[%c14_79] : memref<16xf32, #tpu.memory_space<smem>>
    %cst_80 = arith.constant -5.000000e-01 : f32
    %295 = arith.mulf %cst_80, %294 : f32
    %296 = vector.broadcast %295 : f32 to vector<10x135xf32>
    %297 = arith.mulf %296, %141 : vector<10x135xf32>
    %298 = math.exp %297 : vector<10x135xf32>
    %299 = vector.broadcast %285 : vector<1x135xf32> to vector<10x135xf32>
    %300 = arith.mulf %293, %299 : vector<10x135xf32>
    %301 = arith.addf %278, %300 : vector<10x135xf32>
    %302 = vector.broadcast %288 : vector<1x135xf32> to vector<10x135xf32>
    %303 = arith.mulf %298, %302 : vector<10x135xf32>
    %304 = arith.addf %281, %303 : vector<10x135xf32>
    %305 = vector.extract_strided_slice %134 {offsets = [7, 0], sizes = [1, 135], strides = [1, 1]} : vector<8x135xf32> to vector<1x135xf32>
    %c7 = arith.constant 7 : index
    %306 = memref.load %arg3[%c7] : memref<16xf32, #tpu.memory_space<smem>>
    %307 = vector.broadcast %306 : f32 to vector<1x135xf32>
    %308 = arith.mulf %307, %305 : vector<1x135xf32>
    %c15 = arith.constant 15 : index
    %309 = memref.load %arg3[%c15] : memref<16xf32, #tpu.memory_space<smem>>
    %310 = vector.broadcast %309 : f32 to vector<1x135xf32>
    %311 = arith.mulf %310, %305 : vector<1x135xf32>
    %c7_81 = arith.constant 7 : index
    %312 = memref.load %arg2[%c7_81] : memref<16xf32, #tpu.memory_space<smem>>
    %cst_82 = arith.constant -5.000000e-01 : f32
    %313 = arith.mulf %cst_82, %312 : f32
    %314 = vector.broadcast %313 : f32 to vector<10x135xf32>
    %315 = arith.mulf %314, %141 : vector<10x135xf32>
    %316 = math.exp %315 : vector<10x135xf32>
    %c15_83 = arith.constant 15 : index
    %317 = memref.load %arg2[%c15_83] : memref<16xf32, #tpu.memory_space<smem>>
    %cst_84 = arith.constant -5.000000e-01 : f32
    %318 = arith.mulf %cst_84, %317 : f32
    %319 = vector.broadcast %318 : f32 to vector<10x135xf32>
    %320 = arith.mulf %319, %141 : vector<10x135xf32>
    %321 = math.exp %320 : vector<10x135xf32>
    %322 = vector.broadcast %308 : vector<1x135xf32> to vector<10x135xf32>
    %323 = arith.mulf %316, %322 : vector<10x135xf32>
    %324 = arith.addf %301, %323 : vector<10x135xf32>
    %325 = vector.broadcast %311 : vector<1x135xf32> to vector<10x135xf32>
    %326 = arith.mulf %321, %325 : vector<10x135xf32>
    %327 = arith.addf %304, %326 : vector<10x135xf32>
    %cst_85 = arith.constant dense<0.000000e+00> : vector<10xf32>
    %328 = vector.multi_reduction <add>, %324, %cst_85 [1] : vector<10x135xf32> to vector<10xf32>
    %329 = vector.shape_cast %328 : vector<10xf32> to vector<10x1xf32>
    %c0_86 = arith.constant 0 : index
    %330 = memref.load %arg4[%c0_86] : memref<2xf32, #tpu.memory_space<smem>>
    %331 = vector.broadcast %330 : f32 to vector<10x1xf32>
    %332 = arith.addf %329, %331 : vector<10x1xf32>
    %cst_87 = arith.constant dense<0.000000e+00> : vector<10xf32>
    %333 = vector.multi_reduction <add>, %327, %cst_87 [1] : vector<10x135xf32> to vector<10xf32>
    %334 = vector.shape_cast %333 : vector<10xf32> to vector<10x1xf32>
    %c1_88 = arith.constant 1 : index
    %335 = memref.load %arg4[%c1_88] : memref<2xf32, #tpu.memory_space<smem>>
    %336 = vector.broadcast %335 : f32 to vector<10x1xf32>
    %337 = arith.addf %334, %336 : vector<10x1xf32>
    %cst_89 = arith.constant 0.000000e+00 : f32
    %338 = vector.broadcast %cst_89 : f32 to vector<10x1xf32>
    %339 = arith.maximumf %337, %338 : vector<10x1xf32>
    %340 = vector.broadcast %cst_89 : f32 to vector<10x1xf32>
    %341 = arith.subf %337, %340 : vector<10x1xf32>
    %342 = arith.cmpf one, %341, %341 : vector<10x1xf32>
    %343 = vector.broadcast %cst_89 : f32 to vector<10x1xf32>
    %344 = arith.addf %337, %343 : vector<10x1xf32>
    %345 = math.absf %341 : vector<10x1xf32>
    %cst_90 = arith.constant 0.000000e+00 : f32
    %346 = vector.broadcast %cst_90 : f32 to vector<10x1xf32>
    %347 = arith.subf %346, %345 : vector<10x1xf32>
    %348 = math.exp %347 : vector<10x1xf32>
    %349 = math.log1p %348 : vector<10x1xf32>
    %350 = arith.addf %339, %349 : vector<10x1xf32>
    %351 = arith.select %342, %344, %350 : vector<10x1xi1>, vector<10x1xf32>
    %c0_91 = arith.constant 0 : index
    %c0_92 = arith.constant 0 : index
    %c0_93 = arith.constant 0 : index
    %352 = vector.load %arg19[%c0_91, %c0_92, %c0_93] : memref<1x10x1xf32, #tpu.memory_space<vmem>>, vector<1x10x1xf32>
    %353 = vector.shape_cast %352 : vector<1x10x1xf32> to vector<10x1xf32>
    %354 = vector.shape_cast %332 : vector<10x1xf32> to vector<1x10x1xf32>
    tpu.vector_store %arg19[%c0_91, %c0_92, %c0_93], %354 {strides = array<i32>} : memref<1x10x1xf32, #tpu.memory_space<vmem>>, vector<1x10x1xf32>,
    %c0_94 = arith.constant 0 : index
    %c0_95 = arith.constant 0 : index
    %c0_96 = arith.constant 0 : index
    %355 = vector.load %arg20[%c0_94, %c0_95, %c0_96] : memref<1x10x1xf32, #tpu.memory_space<vmem>>, vector<1x10x1xf32>
    %356 = vector.shape_cast %355 : vector<1x10x1xf32> to vector<10x1xf32>
    %357 = vector.shape_cast %351 : vector<10x1xf32> to vector<1x10x1xf32>
    tpu.vector_store %arg20[%c0_94, %c0_95, %c0_96], %357 {strides = array<i32>} : memref<1x10x1xf32, #tpu.memory_space<vmem>>, vector<1x10x1xf32>,
    return
  }
  func.func @transform_0(%arg0: i32) -> i32 {
    %c0_i32 = arith.constant 0 : i32
    %c0_i32_0 = arith.constant 0 : i32
    return %c0_i32 : i32
  }
  func.func @transform_1(%arg0: i32) -> i32 {
    %c0_i32 = arith.constant 0 : i32
    %c0_i32_0 = arith.constant 0 : i32
    return %c0_i32 : i32
  }
  func.func @transform_2(%arg0: i32) -> i32 {
    %c0_i32 = arith.constant 0 : i32
    %c0_i32_0 = arith.constant 0 : i32
    return %c0_i32 : i32
  }
  func.func @transform_3(%arg0: i32) -> i32 {
    %c0_i32 = arith.constant 0 : i32
    %c0_i32_0 = arith.constant 0 : i32
    return %c0_i32 : i32
  }
  func.func @transform_4(%arg0: i32) -> (i32, i32, i32) {
    %c0_i32 = arith.constant 0 : i32
    %c0_i32_0 = arith.constant 0 : i32
    %c0_i32_1 = arith.constant 0 : i32
    return %arg0, %c0_i32, %c0_i32_0 : i32, i32, i32
  }
  func.func @transform_5(%arg0: i32) -> (i32, i32, i32) {
    %c0_i32 = arith.constant 0 : i32
    %c0_i32_0 = arith.constant 0 : i32
    %c0_i32_1 = arith.constant 0 : i32
    return %arg0, %c0_i32, %c0_i32_0 : i32, i32, i32
  }
  func.func @transform_6(%arg0: i32) -> (i32, i32) {
    %c0_i32 = arith.constant 0 : i32
    %c0_i32_0 = arith.constant 0 : i32
    %c0_i32_1 = arith.constant 0 : i32
    return %c0_i32, %c0_i32_0 : i32, i32
  }
  func.func @transform_7(%arg0: i32) -> (i32, i32, i32) {
    %c0_i32 = arith.constant 0 : i32
    %c0_i32_0 = arith.constant 0 : i32
    %c0_i32_1 = arith.constant 0 : i32
    return %arg0, %c0_i32, %c0_i32_0 : i32, i32, i32
  }
  func.func @transform_8(%arg0: i32) -> (i32, i32) {
    %c0_i32 = arith.constant 0 : i32
    %c0_i32_0 = arith.constant 0 : i32
    %c0_i32_1 = arith.constant 0 : i32
    return %c0_i32, %c0_i32_0 : i32, i32
  }
  func.func @transform_9(%arg0: i32) -> (i32, i32) {
    %c0_i32 = arith.constant 0 : i32
    %c0_i32_0 = arith.constant 0 : i32
    %c0_i32_1 = arith.constant 0 : i32
    return %c0_i32, %c0_i32_0 : i32, i32
  }
  func.func @transform_10(%arg0: i32) -> (i32, i32) {
    %c0_i32 = arith.constant 0 : i32
    %c0_i32_0 = arith.constant 0 : i32
    %c0_i32_1 = arith.constant 0 : i32
    return %c0_i32, %c0_i32_0 : i32, i32
  }
  func.func @transform_11(%arg0: i32) -> (i32, i32) {
    %c0_i32 = arith.constant 0 : i32
    %c0_i32_0 = arith.constant 0 : i32
    %c0_i32_1 = arith.constant 0 : i32
    return %c0_i32, %c0_i32_0 : i32, i32
  }
  func.func @transform_12(%arg0: i32) -> (i32, i32) {
    %c0_i32 = arith.constant 0 : i32
    %c0_i32_0 = arith.constant 0 : i32
    %c0_i32_1 = arith.constant 0 : i32
    return %c0_i32, %c0_i32_0 : i32, i32
  }
  func.func @transform_13(%arg0: i32) -> (i32, i32) {
    %c0_i32 = arith.constant 0 : i32
    %c0_i32_0 = arith.constant 0 : i32
    %c0_i32_1 = arith.constant 0 : i32
    return %c0_i32, %c0_i32_0 : i32, i32
  }
  func.func @transform_14(%arg0: i32) -> (i32, i32) {
    %c0_i32 = arith.constant 0 : i32
    %c0_i32_0 = arith.constant 0 : i32
    %c0_i32_1 = arith.constant 0 : i32
    return %c0_i32, %c0_i32_0 : i32, i32
  }
  func.func @transform_15(%arg0: i32) -> (i32, i32) {
    %c0_i32 = arith.constant 0 : i32
    %c0_i32_0 = arith.constant 0 : i32
    %c0_i32_1 = arith.constant 0 : i32
    return %c0_i32, %c0_i32_0 : i32, i32
  }
  func.func @transform_16(%arg0: i32) -> (i32, i32) {
    %c0_i32 = arith.constant 0 : i32
    %c0_i32_0 = arith.constant 0 : i32
    %c0_i32_1 = arith.constant 0 : i32
    return %c0_i32, %c0_i32_0 : i32, i32
  }
  func.func @transform_17(%arg0: i32) -> (i32, i32) {
    %c0_i32 = arith.constant 0 : i32
    %c0_i32_0 = arith.constant 0 : i32
    %c0_i32_1 = arith.constant 0 : i32
    return %c0_i32, %c0_i32_0 : i32, i32
  }
  func.func @transform_18(%arg0: i32) -> (i32, i32, i32) {
    %c0_i32 = arith.constant 0 : i32
    %c0_i32_0 = arith.constant 0 : i32
    %c0_i32_1 = arith.constant 0 : i32
    return %arg0, %c0_i32, %c0_i32_0 : i32, i32, i32
  }
  func.func @transform_19(%arg0: i32) -> (i32, i32, i32) {
    %c0_i32 = arith.constant 0 : i32
    %c0_i32_0 = arith.constant 0 : i32
    %c0_i32_1 = arith.constant 0 : i32
    return %arg0, %c0_i32, %c0_i32_0 : i32, i32, i32
  }
}

</mosaic_0001>

<bundles_post_ra>
// kernel: _convcnp_on_grid.1
= control target key start
LH: loop header
LB: loop body
LE: loop exit
PB: predicated region body
PF: predicated region fallthrough
CT: control target
= control target key end

     0   :  { %s4094_s0 = inlined_call_operand.vmem [shape: f32[2], index: 0, kind: input, shape index: {}]   ;;  %s4095_s1 = inlined_call_operand.vmem [shape: f32[16], index: 1, kind: input, shape index: {}]   ;;  %s4096_s2 = inlined_call_operand.vmem [shape: f32[16], index: 2, kind: input, shape index: {}]   ;;  %s4097_s3 = inlined_call_operand.vmem [shape: f32[2], index: 3, kind: input, shape index: {}]   ;;  %s4098_s4 = inlined_call_operand.vmem [shape: f32[2,8,1], index: 4, kind: input, shape index: {}]   ;;  %s4099_s5 = inlined_call_operand.vmem [shape: f32[2,8,1], index: 5, kind: input, shape index: {}]   ;;  %s4100_s6 = inlined_call_operand.vmem [shape: f32[1,151], index: 6, kind: input, shape index: {}]   ;;  %s4101_s7 = inlined_call_operand.vmem [shape: f32[2,10,1], index: 7, kind: input, shape index: {}]   ;;  %s4102_s8 = inlined_call_operand.vmem [shape: f32[8,2], index: 8, kind: input, shape index: {}]   ;;  %s4103_s9 = inlined_call_operand.vmem [shape: f32[8,1], index: 9, kind: input, shape index: {}]   ;;  %s4104_s10 = inlined_call_operand.vmem [shape: f32[16,40], index: 10, kind: input, shape index: {}]   ;;  %s4105_s11 = inlined_call_operand.vmem [shape: f32[16,1], index: 11, kind: input, shape index: {}]   ;;  %s4106_s12 = inlined_call_operand.vmem [shape: f32[32,80], index: 12, kind: input, shape index: {}]   ;;  %s4107_s13 = inlined_call_operand.vmem [shape: f32[32,1], index: 13, kind: input, shape index: {}]   ;;  %s4108_s14 = inlined_call_operand.vmem [shape: f32[16,160], index: 14, kind: input, shape index: {}]   ;;  %s4109_s15 = inlined_call_operand.vmem [shape: f32[16,1], index: 15, kind: input, shape index: {}]   ;;  %s4110_s16 = inlined_call_operand.vmem [shape: f32[8,80], index: 16, kind: input, shape index: {}]   ;;  %s4111_s17 = inlined_call_operand.vmem [shape: f32[8,1], index: 17, kind: input, shape index: {}]   ;;  %s4112_s18 = inlined_call_operand.vmem [shape: f32[2,10,1], index: 18, kind: output, shape index: {0}]   ;;  %s4113_s19 = inlined_call_operand.vmem [shape: f32[2,10,1], index: 19, kind: output, shape index: {1}]  }
   0x1   :  { %4117 = sst [smem:[#allocation24_spill]] %s4094_s0 }
   0x2   :  { %4118 = sst [smem:[#allocation25_spill]] %s4095_s1 }
   0x3   :  { %4119 = sst [smem:[#allocation26_spill]] %s4096_s2 }
   0x4   :  { %4120 = sst [smem:[#allocation27_spill]] %s4097_s3 }
   0x5   :  { %4121 = sst [smem:[#allocation28_spill]] %s4112_s18 }
   0x6   :  { %25 = vsyncpa [#allocation3], 0 }
   0x7   :  { %26 = vsyncpa [#allocation5], 0 }
   0x8   :  { %27 = vsyncpa [#allocation8], 0  ;;  %s3118_s0 = smov 0  }
   0x9 LB: > { %4122 = sst [smem:[#allocation12_spill]] %s3004_s0  ;;  %s3127_s22 = sadd.s32 4294967295, %s3004_s0   ;;  %s3004_s0 = sphi %s3118_s0, %s33_s0  }
   0xa   : > { %s4123_s21 = sld [smem:[#allocation25_spill]]  ;;  %p2439_p0 = scmp.ge.s32.totalorder %s3004_s0, 1 }
   0xb   : > { %p483_p1 = scmp.lt.s32.totalorder %s3004_s0, 3  ;;  %p2562_p2 = scmp.eq.s32.totalorder %s3127_s22, 0 }
   0xc   : > { %s4125_s25 = sld [smem:[#allocation24_spill]]  ;;  %s3006_s18 = smov [#allocation4]  }
   0xd   : > { %p3132_p3 = pnand %p2439_p0, %p483_p1  ;;  %s4126_s28 = sld [smem:[#allocation26_spill]] }
   0xe   : > { %s3007_s23 = smov [#allocation2]   ;;  %s3008_s24 = smov [#allocation6]  }
   0xf   : > { %p2549_p4 = pneg %p3132_p3 }
  0x10   : > { %s505_s1 = sshll.u32 %s4123_s21, 4  ;;  %s4127_s21 = sld [smem:[#allocation27_spill]]  ;;  %s506_s1 = int_to_ptr.vmem [resolvable:$true] %s505_s1 }
  0x11   : > { %p2550_p5 = pnand %p2562_p2, %p2549_p4 }
  0x12   : > { %s495_s3 = sshll.u32 %s4125_s25, 4  ;;  %s3009_s25 = smov [#allocation7]   ;;  %s496_s3 = int_to_ptr.vmem [resolvable:$true] %s495_s3 }
  0x13   : > { %s515_s29 = sshll.u32 %s4126_s28, 4  ;;  %s516_s29 = int_to_ptr.vmem [resolvable:$true] %s515_s29 }
  0x14   : > { %2555 = dma.vmem_to_smem (!%p2550_p5), %s506_s1, 16, %s3006_s18, [#allocation5]  }
  0x15   : > { %2552 = dma.vmem_to_smem (!%p2550_p5), %s496_s3, 16, %s3007_s23, [#allocation3]  }
  0x16   : > { %s525_s0 = sshll.u32 %s4127_s21, 4  ;;  %593 = sbr.rel (%p3132_p3) target bundleno = 1830 (0x726), region = 92  ;;  %s526_s0 = int_to_ptr.vmem [resolvable:$true] %s525_s0 }
  0x17   : > { %2558 = dma.vmem_to_smem (!%p2550_p5), %s516_s29, 16, %s3008_s24, [#allocation5]  }
  0x18   : > { %2561 = dma.vmem_to_smem (!%p2550_p5), %s526_s0, 16, %s3009_s25, [#allocation8]  }
  0x1b   : > { %2991 = dma.done.wait (%p2562_p2), [#allocation3], 16  }
  0x1c   : > { %2993 = vsyncadd (%p2562_p2), [#allocation3], 4294967280 }
  0x1d   : > { %2995 = dma.done.wait (%p2562_p2), [#allocation5], 32  }
  0x1e   : > { %2997 = vsyncadd (%p2562_p2), [#allocation5], 4294967264 }
  0x1f   : > { %2999 = dma.done.wait (%p2562_p2), [#allocation8], 16  }
  0x20   : > { %3001 = vsyncadd (%p2562_p2), [#allocation8], 4294967280 }
  0x21   : > { %615 = sfence }
  0x22   : > { %p679_p6 = scmp.lt.s32.totalorder %s3127_s22, 1  ;;  %v803_v0 = vld [vmem:[%s4102_s8] sm:$0xff]  ;;  %v3010_v2 = vmov 0   ;;  %v3011_v4 = vmov 1   ;;  %s719_s21 = sld [smem:[#allocation2]]  ;;  %vm743_vm0 = vcmask 187392  }
  0x23   : > { %v819_v1 = vld [vmem:[%s4103_s9] sm:$0xff]  ;;  %2590 = vset.pattern.permute.xlu0 %v3010_v2  ;;  %2591 = vset.pattern.permute.xlu1 %v3010_v2  ;;  %s2458_s23 = sld [smem:[#allocation2 + $0x1]]  ;;  %s3012_s1 = smov 126  }
  0x24   : > { %s4153_s22 = smov (!%p679_p6, %s3127_s22), 1  ;;  %806 = vperm.xlu1 %2591, %v803_v0   ;;  %2593 = vset.pattern.permute.xlu2 %v3010_v2  ;;  %v702_v6 = vld [vmem:[%s4100_s6] sm:$0x3]  ;;  %s3013_s2 = smov 125  }
  0x25   : > { %822 = vperm.xlu2 %2593, %v819_v1   ;;  %s2450_s3 = sshll.u32 %s4153_s22, 3  ;;  %v3183_v7 = vperm.slane %v702_v6, 0  ;;  %v3185_v8 = vperm.slane %v702_v6, 1  ;;  %s3015_s26 = smov 127  }
  0x26   : > { %s682_s28 = scalar_lea.vmem %s4098_s4, %s2450_s3  ;;  %s686_s20 = scalar_lea.vmem %s4099_s5, %s2450_s3 }
  0x27   : > { %v703_v3 = vld [vmem:[%s682_s28] sm:$0xff]  ;;  %s3014_s3 = smov 124   ;;  %s3510_s30 = sshll.u32 %s4153_s22, 4 }
  0x28   : > { %712 = vperm.xlu0 %2590, %v703_v3   ;;  %v704_v5 = vld [vmem:[%s686_s20] sm:$0xff]  ;;  %s720_s18 = smul.f32 -0.5, %s719_s21  ;;  %s3560_s27 = sld [smem:[#allocation6 + $0xb]] }
  0x29   : > { %s729_s0 = smul.f32 -0.5, %s2458_s23  ;;  %s691_s23 = scalar_lea.vmem %s4101_s7, %s3510_s30 }
  0x2a   : > { %v721_v12 = vstv %s720_s18  ;;  %s3556_s18 = sld [smem:[#allocation6 + $0xd]]  ;;  %s3016_s20 = smov 8  }
  0x2b   : > { %v730_v13 = vstv %s729_s0  ;;  %s3558_s0 = sld [smem:[#allocation6 + $0xc]] }
  0x2c   : > { %2592 = vset.pattern.permute.xlu1 %v3011_v4  ;;  %s3570_s28 = sld [smem:[#allocation6 + $0xf]] }
  0x2d   : > { %812 = vperm.xlu1 %2592, %v803_v0   ;;  %s3574_s29 = sld [smem:[#allocation6]] }
  0x2e   : > { %s3579_s21 = sld [smem:[#allocation6 + $0xe]] }
  0x2f   : > { %s3592_s24 = sld [smem:[#allocation6 + $0x1]] }
  0x30   : > { %753 = vperm.xlu0 %2590, %v704_v5   ;;  %s3616_s25 = sld [smem:[#allocation6 + $0x3]] }
  0x31   : > { %s3620_s22 = sld [smem:[#allocation6 + $0x4]] }
  0x35   : > { %2609 = vset.pattern.permute.xlu1 %v3010_v2 }
  0x96   : > { %v807_v58 = vpop.permute.xlu1 %806 }
  0x9a   : > { %v713_v9 = vpop.permute.xlu0 %712 }
  0x9b   : > { %v715_v10 = vsub.f32 %v3183_v7, %v713_v9  ;;  %v716_v11 = vsub.f32 %v3185_v8, %v713_v9 }
  0x9d   : > { %v717_v14 = vmul.f32 %v715_v10, %v715_v10  ;;  %v718_v15 = vmul.f32 %v716_v11, %v716_v11 }
  0x9f   : > { %v722_v16 = vmul.f32 %v721_v12, %v717_v14  ;;  %v723_v17 = vmul.f32 %v721_v12, %v718_v15  ;;  %v731_v18 = vmul.f32 %v730_v13, %v717_v14  ;;  %v732_v19 = vmul.f32 %v730_v13, %v718_v15  ;;  %v813_v13 = vpop.permute.xlu1 %812 }
  0xa1   : > { %v724_v20 = vmul.f32 1.442695, %v722_v16  ;;  %v726_v21 = vmul.f32 1.442695, %v723_v17  ;;  %v733_v22 = vmul.f32 1.442695, %v731_v18 }
  0xa2   : > { %v735_v23 = vmul.f32 1.442695, %v732_v19  ;;  %v754_v31 = vpop.permute.xlu0 %753 }
  0xa3   : > { %2770 = vpow2.f32 %v724_v20 }
  0xa4   : > { %2772 = vpow2.f32 %v726_v21 }
  0xa5   : > { %2774 = vpow2.f32 %v733_v22 }
  0xa6   : > { %2776 = vpow2.f32 %v735_v23  ;;  %v823_v23 = vpop.permute.xlu2 %822 }
  0xa9   : > { %v2771_v24 = vpop.eup %2770 }
  0xaa   : > { %v2773_v25 = vpop.eup %2772  ;;  %v737_v26 = vrot.slane %v2771_v24, 4 }
  0xab   : > { %v2775_v27 = vpop.eup %2774  ;;  %v744_v28 = vsel %vm743_vm0, %v2773_v25, 0.0 }
  0xac   : > { %v2777_v29 = vpop.eup %2776  ;;  %v745_v30 = vrot.slane %v744_v28, 4  ;;  %v738_v32 = vadd.f32 %v2771_v24, %v737_v26  ;;  %v756_v35 = vmul.f32 %v2775_v27, %v754_v31 }
  0xad   : > { %v757_v33 = vmul.f32 %v2777_v29, %v754_v31 }
  0xae   : > { %v746_v34 = vadd.f32 %v745_v30, %v744_v28  ;;  %v739_v36 = vrot.slane %v738_v32, 2  ;;  %v758_v40 = vrot.slane %v756_v35, 4 }
  0xaf   : > { %v764_v39 = vsel %vm743_vm0, %v757_v33, 0.0 }
  0xb0   : > { %v740_v37 = vadd.f32 %v739_v36, %v738_v32  ;;  %v747_v38 = vrot.slane %v746_v34, 2  ;;  %v765_v43 = vrot.slane %v764_v39, 4  ;;  %v759_v46 = vadd.f32 %v758_v40, %v756_v35 }
  0xb1   : > { %v865_v36 = vlaneseq }
  0xb2   : > { %v741_v41 = vrot.slane %v740_v37, 1  ;;  %v748_v42 = vadd.f32 %v747_v38, %v746_v34  ;;  %v766_v49 = vadd.f32 %v765_v43, %v764_v39  ;;  %v760_v51 = vrot.slane %v759_v46, 2 }
  0xb3   : > { %v3191_v40 = vand.u32 127, %v865_v36 }
  0xb4   : > { %v742_v44 = vadd.f32 %v741_v41, %v740_v37  ;;  %v749_v45 = vrot.slane %v748_v42, 1  ;;  %v767_v52 = vrot.slane %v766_v49, 2  ;;  %v761_v54 = vadd.f32 %v760_v51, %v759_v46 }
  0xb5   : > { %vm868_vm13 = vcmp.ge.s32.totalorder %v3191_v40, 8 }
  0xb6   : > { %v750_v47 = vadd.f32 %v749_v45, %v748_v42  ;;  %v771_v48 = vadd.f32 1e-08, %v742_v44  ;;  %v768_v57 = vadd.f32 %v767_v52, %v766_v49  ;;  %v762_v61 = vrot.slane %v761_v54, 1 }
  0xb7   : > { %v809_v20 = vmul.f32 %v807_v58, %v742_v44 }
  0xb8   : > { %v772_v50 = vadd.f32 1e-08, %v750_v47  ;;  %2778 = vrcp.f32 %v771_v48  ;;  %v784_v62 = vand.u32 2147483648, %v771_v48  ;;  %v782_v0 = vand.u32 2147483647, %v771_v48 }
  0xb9   : > { %v769_v2 = vrot.slane %v768_v57, 1  ;;  %vm778_vm2 = vweird.f32 %v771_v48  ;;  %v763_v9 = vadd.f32 %v762_v61, %v761_v54  ;;  %v810_v24 = vmul.f32 %v807_v58, %v750_v47 }
  0xba   : > { %2780 = vrcp.f32 %v772_v50  ;;  %v799_v3 = vand.u32 2147483648, %v772_v50  ;;  %v797_v6 = vand.u32 2147483647, %v772_v50  ;;  %v785_v10 = vor.u32 1.1754944e-38, %v784_v62  ;;  %v916_v62 = vld [vmem:[%s4105_s11] sm:$0xff] }
  0xbb   : > { %vm783_vm5 = vcmp.eq.f32.partialorder %v782_v0, 8.507059e+37  ;;  %vm793_vm6 = vweird.f32 %v772_v50  ;;  %v770_v16 = vadd.f32 %v769_v2, %v768_v57 }
  0xbc   : > { %v800_v15 = vor.u32 1.1754944e-38, %v799_v3  ;;  %vm798_vm8 = vcmp.eq.f32.partialorder %v797_v6, 8.507059e+37  ;;  %v917_v3 = vld [vmem:[%s4105_s11 + $0x8] sm:$0xff] }
  0xbe   : > { %v2779_v53 = vpop.eup %2778 }
  0xbf   : > { %v774_v55 = vmul.f32 %v2779_v53, %v771_v48  ;;  %vm779_vm1 = vweird.f32 %v2779_v53  ;;  %v3194_v48 = vadd.s32 128, %v3191_v40 }
  0xc0   : > { %v2781_v56 = vpop.eup %2780  ;;  %vm780_vm4 = vmor %vm778_vm2, %vm779_vm1 }
  0xc1   : > { %v775_v59 = vsub.f32 1.0, %v774_v55  ;;  %v789_v60 = vmul.f32 %v2781_v56, %v772_v50  ;;  %vm794_vm3 = vweird.f32 %v2781_v56  ;;  %vm871_vm1 = vcmp.lt.s32.totalorder %v3194_v48, 143 }
  0xc2   : > { %vm795_vm7 = vmor %vm793_vm6, %vm794_vm3  ;;  %vm910_vm3 = vcmask 1014784   ;;  %vm886_vm6 = vcmask 1039360  }
  0xc3   : > { %v776_v63 = vmul.f32 %v2779_v53, %v775_v59  ;;  %v790_v1 = vsub.f32 1.0, %v789_v60 }
  0xc5   : > { %v777_v4 = vadd.f32 %v2779_v53, %v776_v63  ;;  %v791_v5 = vmul.f32 %v2781_v56, %v790_v1 }
  0xc7   : > { %v781_v11 = vsel %vm780_vm4, %v2779_v53, %v777_v4  ;;  %v792_v12 = vadd.f32 %v2781_v56, %v791_v5  ;;  %vm902_vm4 = vcmask 1022976  }
  0xc8   : > { %v786_v14 = vsel %vm783_vm5, %v785_v10, %v781_v11  ;;  %vm894_vm5 = vcmask 1031168  }
  0xc9   : > { %v787_v17 = vmul.f32 %v786_v14, %v763_v9  ;;  %v796_v18 = vsel %vm795_vm7, %v2781_v56, %v792_v12  ;;  %vm928_vm7 = vcmask 326656  }
  0xca   : > { %v801_v19 = vsel %vm798_vm8, %v800_v15, %v796_v18  ;;  %v914_v15 = vld [vmem:[%s4104_s10] sm:$0xff]  ;;  %v915_v18 = vld [vmem:[%s4104_s10 + $0x8] sm:$0xff]  ;;  %vm988_vm8 = vcmp.lt.s32.totalorder %v3194_v48, 141 }
  0xcb   : > { %v802_v21 = vmul.f32 %v801_v19, %v770_v16  ;;  %v815_v22 = vmul.f32 %v813_v13, %v787_v17 }
  0xcd   : > { %v816_v25 = vmul.f32 %v813_v13, %v802_v21  ;;  %v817_v26 = vadd.f32 %v815_v22, %v809_v20 }
  0xcf   : > { %v818_v27 = vadd.f32 %v816_v25, %v810_v24  ;;  %v825_v28 = vadd.f32 %v823_v23, %v817_v26 }
  0xd1   : > { %v826_v29 = vadd.f32 %v823_v23, %v818_v27  ;;  %v2459_v30 = vmul.f32 -1.442695, %v825_v28 }
  0xd3   : > { %2782 = vpow2.f32 %v2459_v30  ;;  %v2460_v31 = vmul.f32 -1.442695, %v826_v29 }
  0xd5   : > { %2784 = vpow2.f32 %v2460_v31 }
  0xd9   : > { %v2783_v32 = vpop.eup %2782 }
  0xda   : > { %v833_v33 = vadd.f32 1.0, %v2783_v32 }
  0xdb   : > { %v2785_v34 = vpop.eup %2784 }
  0xdc   : > { %v834_v35 = vadd.f32 1.0, %v2785_v34  ;;  %2786 = vrcp.f32 %v833_v33  ;;  %v846_v43 = vand.u32 2147483648, %v833_v33  ;;  %v844_v46 = vand.u32 2147483647, %v833_v33 }
  0xdd   : > { %vm840_vm10 = vweird.f32 %v833_v33 }
  0xde   : > { %2788 = vrcp.f32 %v834_v35  ;;  %v861_v47 = vand.u32 2147483648, %v834_v35  ;;  %v859_v51 = vand.u32 2147483647, %v834_v35  ;;  %v847_v52 = vor.u32 1.1754944e-38, %v846_v43  ;;  %v1063_v43 = vld [vmem:[%s4107_s13] sm:$0xff] }
  0xdf   : > { %vm845_vm14 = vcmp.eq.f32.partialorder %v844_v46, 8.507059e+37  ;;  %vm855_vm15 = vweird.f32 %v834_v35 }
  0xe0   : > { %v862_v56 = vor.u32 1.1754944e-38, %v861_v47  ;;  %vm860_vm2 = vcmp.eq.f32.partialorder %v859_v51, 8.507059e+37 }
  0xe2   : > { %v2787_v37 = vpop.eup %2786 }
  0xe3   : > { %v836_v38 = vmul.f32 %v2787_v37, %v833_v33  ;;  %vm841_vm9 = vweird.f32 %v2787_v37 }
  0xe4   : > { %v2789_v39 = vpop.eup %2788  ;;  %vm842_vm12 = vmor %vm840_vm10, %vm841_vm9  ;;  %vm985_vm9 = vcmp.ge.s32.totalorder %v3191_v40, 6  ;;  %vm1087_vm10 = vcmask 654336  }
  0xe5   : > { %v837_v41 = vsub.f32 1.0, %v836_v38  ;;  %v851_v42 = vmul.f32 %v2789_v39, %v834_v35  ;;  %vm856_vm11 = vweird.f32 %v2789_v39 }
  0xe6   : > { %vm857_vm0 = vmor %vm855_vm15, %vm856_vm11  ;;  %vm1166_vm11 = vcmp.ge.s32.totalorder %v3191_v40, 4  ;;  %vm1423_vm15 = vcmp.ge.s32.totalorder %v3191_v40, 2 }
  0xe7   : > { %v852_v44 = vsub.f32 1.0, %v851_v42  ;;  %v838_v45 = vmul.f32 %v2787_v37, %v837_v41  ;;  %v1065_v41 = vld [vmem:[%s4107_s13 + $0x10] sm:$0xff]  ;;  %v1064_v42 = vld [vmem:[%s4107_s13 + $0x8] sm:$0xff] }
  0xe9   : > { %v839_v49 = vadd.f32 %v2787_v37, %v838_v45  ;;  %v853_v50 = vmul.f32 %v2789_v39, %v852_v44 }
  0xeb   : > { %v843_v53 = vsel %vm842_vm12, %v2787_v37, %v839_v49  ;;  %v854_v54 = vadd.f32 %v2789_v39, %v853_v50  ;;  %vm1169_vm12 = vcmp.lt.s32.totalorder %v3194_v48, 139 }
  0xec   : > { %v848_v55 = vsel %vm845_vm14, %v847_v52, %v843_v53  ;;  %vm1426_vm14 = vcmp.lt.s32.totalorder %v3194_v48, 137 }
  0xed   : > { %v858_v57 = vsel %vm857_vm0, %v2789_v39, %v854_v54  ;;  %v878_v58 = vsel %vm868_vm13, %v848_v55, 0.0  ;;  %v1066_v39 = vld [vmem:[%s4107_s13 + $0x18] sm:$0xff]  ;;  %vm1613_vm0 = vcmask 64512  }
  0xee   : > { %v863_v59 = vsel %vm860_vm2, %v862_v56, %v858_v57  ;;  %vm2202_vm2 = vcmask 50176  }
  0xef   : > { %v879_v60 = vsel %vm871_vm1, %v863_v59, 0.0 }
  0xf0   : > { %v2604_v61 = vpack.i.bf16 %v878_v58, %v879_v60 }
  0xf2   : > { %2605 = vrot.lane.b32.xlu1 %v2604_v61, %s3012_s1  ;;  %2600 = vrot.lane.b32.xlu0 %v2604_v61, %s3013_s2 }
  0xf3   : > { %2595 = vrot.lane.b32.xlu2 %v2604_v61, %s3014_s3 }
  0xfa   : > { %882 = vrot.lane.b32.xlu0 %v878_v58, %s3015_s26  ;;  %925 = vperm.xlu1 %2609, %v917_v3  }
  0xfb   : > { %884 = vrot.lane.b32.xlu2 %v879_v60, %s3015_s26 }
 0x103   : > { %920 = vperm.xlu2 %2593, %v916_v62  }
 0x14d   : > { %v2596_v63 = vpop.permute.xlu2 %2595 }
 0x14e   : > { %v2598_v0 = vunpack.i.h.bf16 %v2596_v63  ;;  %v2597_v1 = vunpack.i.l.bf16 %v2596_v63 }
 0x150   : > { %969 = vmatpush.msra.mxu1 %v2597_v1  ;;  %v911_v2 = vsel %vm910_vm3, %v2598_v0, %v2597_v1 }
 0x151   : > { %946 = vmatpush.msra.mxu0 %v911_v2 }
 0x155   : > { %v885_v14 = vpop.permute.xlu2 %884 }
 0x15d   : > { %v921_v21 = vpop.permute.xlu2 %920 }
 0x164   : > { %v2606_v4 = vpop.permute.xlu1 %2605  ;;  %v2601_v5 = vpop.permute.xlu0 %2600 }
 0x165   : > { %v2608_v6 = vunpack.i.h.bf16 %v2606_v4  ;;  %v2603_v9 = vunpack.i.h.bf16 %v2601_v5  ;;  %v2602_v10 = vunpack.i.l.bf16 %v2601_v5  ;;  %v2607_v11 = vunpack.i.l.bf16 %v2606_v4 }
 0x167   : > { %970 = vmatpush.msra.mxu1 %v2602_v10  ;;  %v903_v12 = vsel %vm902_vm4, %v2603_v9, %v2602_v10  ;;  %v895_v13 = vsel %vm894_vm5, %v2608_v6, %v2607_v11 }
 0x168   : > { %947 = vmatpush.msra.mxu0 %v903_v12 }
 0x169   : > { %971 = vmatpush.msra.mxu1 %v2607_v11  ;;  %v1059_v11 = vld [vmem:[%s4106_s12] sm:$0xff] }
 0x16a   : > { %948 = vmatpush.msra.mxu0 %v895_v13 }
 0x16b   : > { %972 = vmatpush.msra.mxu1 %v885_v14 }
 0x16c   : > { %v883_v16 = vpop.permute.xlu0 %882  ;;  %v926_v23 = vpop.permute.xlu1 %925 }
 0x16d   : > { %2464 = vmatpush.msk.msra.mxu1 %vm871_vm1, %v863_v59  ;;  %v887_v17 = vsel %vm886_vm6, %v883_v16, %v885_v14  ;;  %v1060_v16 = vld [vmem:[%s4106_s12 + $0x8] sm:$0xff]  ;;  %vm2188_vm1 = vcmask 982016  }
 0x16e   : > { %949 = vmatpush.msra.mxu0 %v887_v17  ;;  %2465 = vmatmul.msk.f32.vlgmr.msra.gmra.mxu1 %vm928_vm7, %v914_v15  ;;  %v1061_v17 = vld [vmem:[%s4106_s12 + $0x10] sm:$0xff] }
 0x170   : > { %2461 = vmatpush.msk.msra.mxu0 %vm868_vm13, %v848_v55  ;;  %vm1320_vm13 = vcmask 261120  }
 0x171   : > { %2462 = vmatmul.msk.f32.vlgmr.msra.gmra.mxu0 %vm928_vm7, %v914_v15 }
 0x176   : > { %2466 = vmatmul.msk.f32.gmra.mxu1 %vm928_vm7, %v915_v18 }
 0x179   : > { %2463 = vmatmul.msk.f32.gmra.mxu0 %vm928_vm7, %v915_v18  ;;  %v1062_v18 = vld [vmem:[%s4106_s12 + $0x18] sm:$0xff] }
 0x1eb   : > { %v975_v19 = vpop.f32.mrf.mxu1 }
 0x1ec   : > { %v3227_v22 = vadd.f32 %v975_v19, %v921_v21 }
 0x1ee   : > { %v952_v20 = vpop.f32.mrf.mxu0  ;;  %v982_v26 = vmax.f32 %v3227_v22, 0.0 }
 0x1ef   : > { %v3229_v24 = vadd.f32 %v952_v20, %v921_v21 }
 0x1f0   : > { %v996_v32 = vsel %vm988_vm8, %v982_v26, 0.0 }
 0x1f1   : > { %v981_v30 = vmax.f32 %v3229_v24, 0.0 }
 0x1f3   : > { %v978_v25 = vpop.f32.mrf.mxu1  ;;  %v995_v36 = vsel %vm985_vm9, %v981_v30, 0.0 }
 0x1f4   : > { %v3232_v27 = vadd.f32 %v978_v25, %v926_v23 }
 0x1f6   : > { %v984_v28 = vmax.f32 %v3232_v27, 0.0  ;;  %v955_v29 = vpop.f32.mrf.mxu0 }
 0x1f7   : > { %v3237_v31 = vadd.f32 %v955_v29, %v926_v23 }
 0x1f8   : > { %v998_v33 = vsel %vm988_vm8, %v984_v28, 0.0 }
 0x1f9   : > { %v983_v34 = vmax.f32 %v3237_v31, 0.0  ;;  %v2615_v35 = vpack.i.bf16 %v996_v32, %v998_v33 }
 0x1fb   : > { %v997_v37 = vsel %vm985_vm9, %v983_v34, 0.0  ;;  %2616 = vrot.lane.b32.xlu1 %v2615_v35, %s3013_s2  ;;  %2611 = vrot.lane.b32.xlu0 %v2615_v35, %s3014_s3 }
 0x1fc   : > { %v2625_v38 = vpack.i.bf16 %v995_v36, %v997_v37 }
 0x1fe   : > { %2626 = vrot.lane.b32.xlu2 %v2625_v38, %s3014_s3 }
 0x203   : > { %2621 = vrot.lane.b32.xlu0 %v2615_v35, %s3012_s1  ;;  %2636 = vrot.lane.b32.xlu1 %v2625_v38, %s3013_s2 }
 0x206   : > { %2631 = vrot.lane.b32.xlu2 %v2615_v35, %s3015_s26 }
 0x20b   : > { %2641 = vrot.lane.b32.xlu0 %v2625_v38, %s3012_s1  ;;  %2646 = vrot.lane.b32.xlu1 %v2625_v38, %s3015_s26 }
 0x20e   : > { %1084 = vperm.xlu2 %2593, %v1066_v39  }
 0x213   : > { %1079 = vperm.xlu0 %2590, %v1065_v41   ;;  %1074 = vperm.xlu1 %2609, %v1064_v42  }
 0x216   : > { %1069 = vperm.xlu2 %2593, %v1063_v43  }
 0x258   : > { %v2627_v44 = vpop.permute.xlu2 %2626 }
 0x259   : > { %v2628_v47 = vunpack.i.l.bf16 %v2627_v44  ;;  %v2629_v51 = vunpack.i.h.bf16 %v2627_v44 }
 0x260   : > { %v2632_v61 = vpop.permute.xlu2 %2631 }
 0x261   : > { %v2633_v1 = vunpack.i.l.bf16 %v2632_v61  ;;  %v2634_v2 = vunpack.i.h.bf16 %v2632_v61 }
 0x268   : > { %v1085_v20 = vpop.permute.xlu2 %1084 }
 0x26d   : > { %v2617_v45 = vpop.permute.xlu1 %2616  ;;  %v2612_v46 = vpop.permute.xlu0 %2611 }
 0x26e   : > { %v2613_v49 = vunpack.i.l.bf16 %v2612_v46  ;;  %v2614_v50 = vunpack.i.h.bf16 %v2612_v46  ;;  %v2618_v54 = vunpack.i.l.bf16 %v2617_v45  ;;  %v2619_v55 = vunpack.i.h.bf16 %v2617_v45 }
 0x270   : > { %1135 = vmatpush.msra.mxu3 %v2613_v49  ;;  %v1054_v52 = vsel %vm910_vm3, %v2628_v47, %v2613_v49  ;;  %v1053_v53 = vsel %vm910_vm3, %v2629_v51, %v2614_v50  ;;  %v1070_v23 = vpop.permute.xlu2 %1069 }
 0x271   : > { %1106 = vmatpush.msra.mxu2 %v1054_v52 }
 0x272   : > { %1136 = vmatpush.msra.mxu3 %v2614_v50 }
 0x273   : > { %1107 = vmatpush.msra.mxu2 %v1053_v53 }
 0x274   : > { %1137 = vmatpush.msra.mxu3 %v2618_v54 }
 0x275   : > { %v2622_v56 = vpop.permute.xlu0 %2621  ;;  %v2637_v57 = vpop.permute.xlu1 %2636 }
 0x276   : > { %v2639_v58 = vunpack.i.h.bf16 %v2637_v57  ;;  %v2638_v59 = vunpack.i.l.bf16 %v2637_v57  ;;  %1138 = vmatpush.msra.mxu3 %v2619_v55  ;;  %v2623_v60 = vunpack.i.l.bf16 %v2622_v56  ;;  %v2624_v63 = vunpack.i.h.bf16 %v2622_v56 }
 0x278   : > { %1139 = vmatpush.msra.mxu3 %v2623_v60  ;;  %v1040_v62 = vsel %vm902_vm4, %v2638_v59, %v2618_v54  ;;  %v1039_v0 = vsel %vm902_vm4, %v2639_v58, %v2619_v55 }
 0x279   : > { %1108 = vmatpush.msra.mxu2 %v1040_v62 }
 0x27a   : > { %1140 = vmatpush.msra.mxu3 %v2624_v63 }
 0x27b   : > { %1109 = vmatpush.msra.mxu2 %v1039_v0 }
 0x27c   : > { %1141 = vmatpush.msra.mxu3 %v2633_v1 }
 0x27d   : > { %v2642_v3 = vpop.permute.xlu0 %2641  ;;  %v2647_v4 = vpop.permute.xlu1 %2646 }
 0x27e   : > { %v2644_v5 = vunpack.i.h.bf16 %v2642_v3  ;;  %v2643_v6 = vunpack.i.l.bf16 %v2642_v3  ;;  %1142 = vmatpush.msra.mxu3 %v2634_v2  ;;  %v2648_v9 = vunpack.i.l.bf16 %v2647_v4  ;;  %v2649_v12 = vunpack.i.h.bf16 %v2647_v4 }
 0x280   : > { %2473 = vmatpush.msk.msra.mxu3 %vm988_vm8, %v984_v28  ;;  %v1026_v10 = vsel %vm894_vm5, %v2643_v6, %v2623_v60  ;;  %v1025_v13 = vsel %vm894_vm5, %v2644_v5, %v2624_v63  ;;  %v1012_v14 = vsel %vm886_vm6, %v2648_v9, %v2633_v1  ;;  %v1011_v15 = vsel %vm886_vm6, %v2649_v12, %v2634_v2  ;;  %v1308_v1 = vld [vmem:[%s4109_s15] sm:$0xff]  ;;  %v1309_v2 = vld [vmem:[%s4109_s15 + $0x8] sm:$0xff] }
 0x281   : > { %1110 = vmatpush.msra.mxu2 %v1026_v10 }
 0x282   : > { %2474 = vmatpush.msk.msra.mxu3 %vm988_vm8, %v982_v26  ;;  %vm2278_vm8 = vcmask 7168  }
 0x283   : > { %1111 = vmatpush.msra.mxu2 %v1025_v13  ;;  %2475 = vmatmul.msk.f32.vlgmr.msra.gmra.mxu3 %vm1087_vm10, %v1059_v11 }
 0x285   : > { %1112 = vmatpush.msra.mxu2 %v1012_v14  ;;  %v1075_v26 = vpop.permute.xlu1 %1074  ;;  %v1080_v35 = vpop.permute.xlu0 %1079 }
 0x287   : > { %1113 = vmatpush.msra.mxu2 %v1011_v15 }
 0x289   : > { %2467 = vmatpush.msk.msra.mxu2 %vm985_vm9, %v983_v34 }
 0x28b   : > { %2468 = vmatpush.msk.msra.mxu2 %vm985_vm9, %v981_v30  ;;  %2476 = vmatmul.msk.f32.gmra.mxu3 %vm1087_vm10, %v1060_v16 }
 0x28c   : > { %2469 = vmatmul.msk.f32.vlgmr.msra.gmra.mxu2 %vm1087_vm10, %v1059_v11 }
 0x293   : > { %2477 = vmatmul.msk.f32.gmra.mxu3 %vm1087_vm10, %v1061_v17 }
 0x294   : > { %2470 = vmatmul.msk.f32.gmra.mxu2 %vm1087_vm10, %v1060_v16 }
 0x29b   : > { %2478 = vmatmul.msk.f32.gmra.mxu3 %vm1087_vm10, %v1062_v18 }
 0x29c   : > { %2471 = vmatmul.msk.f32.gmra.mxu2 %vm1087_vm10, %v1061_v17 }
 0x2a4   : > { %2472 = vmatmul.msk.f32.gmra.mxu2 %vm1087_vm10, %v1062_v18 }
 0x306   : > { %v1146_v19 = vpop.f32.mrf.mxu3 }
 0x307   : > { %v3328_v31 = vadd.f32 %v1146_v19, %v1070_v23 }
 0x309   : > { %v1159_v38 = vmax.f32 %v3328_v31, 0.0  ;;  %v1306_v31 = vld [vmem:[%s4108_s14 + $0x10] sm:$0xff] }
 0x30b   : > { %v1177_v43 = vsel %vm1169_vm12, %v1159_v38, 0.0 }
 0x30e   : > { %v1149_v21 = vpop.f32.mrf.mxu3 }
 0x30f   : > { %v1117_v22 = vpop.f32.mrf.mxu2  ;;  %v3350_v44 = vadd.f32 %v1149_v21, %v1075_v26 }
 0x310   : > { %v3321_v24 = vadd.f32 %v1117_v22, %v1070_v23 }
 0x311   : > { %v1161_v51 = vmax.f32 %v3350_v44, 0.0 }
 0x312   : > { %v1158_v28 = vmax.f32 %v3321_v24, 0.0 }
 0x313   : > { %v1179_v56 = vsel %vm1169_vm12, %v1161_v51, 0.0 }
 0x314   : > { %v1176_v32 = vsel %vm1166_vm11, %v1158_v28, 0.0 }
 0x315   : > { %v2710_v0 = vpack.i.bf16 %v1177_v43, %v1176_v32 }
 0x316   : > { %v1152_v25 = vpop.f32.mrf.mxu3 }
 0x317   : > { %v1120_v27 = vpop.f32.mrf.mxu2  ;;  %v3352_v45 = vadd.f32 %v1152_v25, %v1080_v35 }
 0x318   : > { %v3324_v29 = vadd.f32 %v1120_v27, %v1075_v26 }
 0x319   : > { %v1163_v52 = vmax.f32 %v3352_v45, 0.0  ;;  %v1307_v45 = vld [vmem:[%s4108_s14 + $0x18] sm:$0xff] }
 0x31a   : > { %v1160_v30 = vmax.f32 %v3324_v29, 0.0 }
 0x31b   : > { %v1181_v57 = vsel %vm1169_vm12, %v1163_v52, 0.0 }
 0x31c   : > { %v1178_v33 = vsel %vm1166_vm11, %v1160_v30, 0.0 }
 0x31d   : > { %v2650_v34 = vpack.i.bf16 %v1176_v32, %v1178_v33  ;;  %v2700_v62 = vpack.i.bf16 %v1179_v56, %v1178_v33 }
 0x31e   : > { %v1155_v36 = vpop.f32.mrf.mxu3 }
 0x31f   : > { %v1123_v37 = vpop.f32.mrf.mxu2  ;;  %2651 = vrot.lane.b32.xlu1 %v2650_v34, %s3013_s2  ;;  %v3343_v41 = vadd.f32 %v1155_v36, %v1085_v20 }
 0x320   : > { %v3340_v39 = vadd.f32 %v1123_v37, %v1080_v35 }
 0x321   : > { %v1165_v49 = vmax.f32 %v3343_v41, 0.0 }
 0x322   : > { %v1162_v42 = vmax.f32 %v3340_v39, 0.0 }
 0x323   : > { %v1183_v54 = vsel %vm1169_vm12, %v1165_v49, 0.0 }
 0x324   : > { %v1180_v46 = vsel %vm1166_vm11, %v1162_v42, 0.0  ;;  %v2665_v59 = vpack.i.bf16 %v1181_v57, %v1183_v54 }
 0x325   : > { %v2660_v47 = vpack.i.bf16 %v1180_v46, %v1177_v43  ;;  %v2690_v61 = vpack.i.bf16 %v1181_v57, %v1180_v46 }
 0x327   : > { %v1126_v50 = vpop.f32.mrf.mxu2  ;;  %2661 = vrot.lane.b32.xlu0 %v2660_v47, %s3012_s1  ;;  %2656 = vrot.lane.b32.xlu2 %v2660_v47, %s3013_s2 }
 0x328   : > { %v3363_v53 = vadd.f32 %v1126_v50, %v1085_v20 }
 0x32a   : > { %v1164_v55 = vmax.f32 %v3363_v53, 0.0 }
 0x32c   : > { %v1182_v58 = vsel %vm1166_vm11, %v1164_v55, 0.0 }
 0x32d   : > { %v2685_v60 = vpack.i.bf16 %v1182_v58, %v1179_v56  ;;  %v2705_v63 = vpack.i.bf16 %v1183_v54, %v1182_v58 }
 0x32f   : > { %2666 = vrot.lane.b32.xlu0 %v2665_v59, %s3013_s2  ;;  %2681 = vrot.lane.b32.xlu2 %v2665_v59, %s3015_s26 }
 0x330   : > { %2686 = vrot.lane.b32.xlu1 %v2685_v60, %s3013_s2 }
 0x337   : > { %2671 = vrot.lane.b32.xlu0 %v2665_v59, %s3012_s1  ;;  %2696 = vrot.lane.b32.xlu2 %v2685_v60, %s3012_s1 }
 0x338   : > { %2691 = vrot.lane.b32.xlu1 %v2690_v61, %s3014_s3 }
 0x33f   : > { %2701 = vrot.lane.b32.xlu2 %v2700_v62, %s3014_s3  ;;  %2676 = vrot.lane.b32.xlu0 %v2650_v34, %s3012_s1 }
 0x340   : > { %2706 = vrot.lane.b32.xlu1 %v2705_v63, %s3014_s3 }
 0x347   : > { %2716 = vrot.lane.b32.xlu2 %v2660_v47, %s3015_s26  ;;  %2721 = vrot.lane.b32.xlu0 %v2685_v60, %s3015_s26 }
 0x348   : > { %2711 = vrot.lane.b32.xlu1 %v2710_v0, %s3014_s3 }
 0x34f   : > { %1312 = vperm.xlu2 %2593, %v1308_v1   ;;  %2726 = vrot.lane.b32.xlu0 %v2650_v34, %s3015_s26 }
 0x350   : > { %1317 = vperm.xlu1 %2609, %v1309_v2  }
 0x381   : > { %v2657_v3 = vpop.permute.xlu2 %2656 }
 0x382   : > { %v2659_v15 = vunpack.i.h.bf16 %v2657_v3  ;;  %v2658_v21 = vunpack.i.l.bf16 %v2657_v3 }
 0x389   : > { %v3401_v4 = vpop.permute.xlu2 %2681 }
 0x38a   : > { %v2683_v57 = vunpack.i.l.bf16 %v3401_v4  ;;  %v2684_v63 = vunpack.i.h.bf16 %v3401_v4 }
 0x391   : > { %v2652_v6 = vpop.permute.xlu1 %2651  ;;  %v2697_v12 = vpop.permute.xlu2 %2696 }
 0x392   : > { %v2654_v18 = vunpack.i.h.bf16 %v2652_v6  ;;  %v2653_v19 = vunpack.i.l.bf16 %v2652_v6  ;;  %v2699_v25 = vunpack.i.h.bf16 %v2697_v12  ;;  %v2698_v37 = vunpack.i.l.bf16 %v2697_v12 }
 0x394   : > { %v1264_v32 = vsel %vm902_vm4, %v2654_v18, %v2658_v21 }
 0x399   : > { %v2662_v5 = vpop.permute.xlu0 %2661  ;;  %v2702_v36 = vpop.permute.xlu2 %2701 }
 0x39a   : > { %v2664_v35 = vunpack.i.h.bf16 %v2662_v5  ;;  %v2663_v46 = vunpack.i.l.bf16 %v2662_v5  ;;  %v2704_v0 = vunpack.i.h.bf16 %v2702_v36  ;;  %v2703_v1 = vunpack.i.l.bf16 %v2702_v36 }
 0x3a1   : > { %v2667_v9 = vpop.permute.xlu0 %2666  ;;  %v2717_v5 = vpop.permute.xlu2 %2716 }
 0x3a2   : > { %v2687_v10 = vpop.permute.xlu1 %2686  ;;  %v2668_v11 = vunpack.i.l.bf16 %v2667_v9  ;;  %v2669_v14 = vunpack.i.h.bf16 %v2667_v9 }
 0x3a3   : > { %v2689_v13 = vunpack.i.h.bf16 %v2687_v10  ;;  %v2688_v17 = vunpack.i.l.bf16 %v2687_v10  ;;  %v1293_v10 = vsel %vm910_vm3, %v2703_v1, %v2704_v0 }
 0x3a4   : > { %1373 = vmatpush.msrb.mxu2 %v2668_v11  ;;  %v1266_v20 = vsel %vm902_vm4, %v2659_v15, %v2669_v14 }
 0x3a5   : > { %v1267_v16 = vsel %vm902_vm4, %v2689_v13, %v2668_v11  ;;  %v1265_v23 = vsel %vm902_vm4, %v2653_v19, %v2688_v17  ;;  %v2719_v11 = vunpack.i.h.bf16 %v2717_v5  ;;  %v1305_v19 = vld [vmem:[%s4108_s14 + $0x8] sm:$0xff] }
 0x3a6   : > { %1327 = vmatpush.msrb.mxu0 %v1267_v16  ;;  %1374 = vmatpush.msrb.mxu2 %v2669_v14 }
 0x3a8   : > { %1328 = vmatpush.msrb.mxu0 %v1266_v20  ;;  %1375 = vmatpush.msrb.mxu2 %v2688_v17  ;;  %v2718_v17 = vunpack.i.l.bf16 %v2717_v5  ;;  %v1210_v20 = vsel %vm886_vm6, %v2719_v11, %v2684_v63 }
 0x3a9   : > { %v2672_v22 = vpop.permute.xlu0 %2671 }
 0x3aa   : > { %v3406_v26 = vpop.permute.xlu1 %2691  ;;  %1329 = vmatpush.msrb.mxu0 %v1265_v23  ;;  %1376 = vmatpush.msrb.mxu2 %v2658_v21  ;;  %v2673_v27 = vunpack.i.l.bf16 %v2672_v22  ;;  %v2674_v33 = vunpack.i.h.bf16 %v2672_v22 }
 0x3ab   : > { %v2694_v58 = vunpack.i.h.bf16 %v3406_v26  ;;  %v2693_v59 = vunpack.i.l.bf16 %v3406_v26 }
 0x3ac   : > { %1330 = vmatpush.msrb.mxu0 %v1264_v32  ;;  %1377 = vmatpush.msrb.mxu2 %v2673_v27  ;;  %v1239_v34 = vsel %vm894_vm5, %v2699_v25, %v2673_v27  ;;  %v1238_v43 = vsel %vm894_vm5, %v2664_v35, %v2674_v33 }
 0x3ad   : > { %v1294_v6 = vsel %vm910_vm3, %v2693_v59, %v2694_v58  ;;  %v1498_v59 = vld [vmem:[%s4111_s17] sm:$0xff] }
 0x3ae   : > { %1331 = vmatpush.msrb.mxu0 %v1239_v34  ;;  %1378 = vmatpush.msrb.mxu2 %v2674_v33 }
 0x3b0   : > { %1332 = vmatpush.msrb.mxu0 %v1238_v43  ;;  %1379 = vmatpush.msrb.mxu2 %v2698_v37 }
 0x3b1   : > { %v2677_v47 = vpop.permute.xlu0 %2676 }
 0x3b2   : > { %v2679_v50 = vunpack.i.h.bf16 %v2677_v47  ;;  %v2678_v54 = vunpack.i.l.bf16 %v2677_v47  ;;  %v2707_v56 = vpop.permute.xlu1 %2706  ;;  %1380 = vmatpush.msrb.mxu2 %v2663_v46 }
 0x3b3   : > { %v2709_v60 = vunpack.i.h.bf16 %v2707_v56  ;;  %v2708_v61 = vunpack.i.l.bf16 %v2707_v56 }
 0x3b4   : > { %1381 = vmatpush.msrb.mxu2 %v2683_v57  ;;  %v1237_v62 = vsel %vm894_vm5, %v2678_v54, %v2698_v37  ;;  %v1236_v3 = vsel %vm894_vm5, %v2679_v50, %v2663_v46 }
 0x3b5   : > { %1333 = vmatpush.msrb.mxu0 %v1237_v62  ;;  %v1295_v2 = vsel %vm910_vm3, %v2708_v61, %v2709_v60  ;;  %v1548_v61 = vld [vmem:[%s691_s23 + $0x8] sm:$0x3] }
 0x3b6   : > { %1362 = vmatpush.msrb.mxu1 %v1295_v2  ;;  %1382 = vmatpush.msrb.mxu2 %v2684_v63 }
 0x3b7   : > { %1334 = vmatpush.msrb.mxu0 %v1236_v3 }
 0x3b8   : > { %1363 = vmatpush.msrb.mxu1 %v1294_v6 }
 0x3b9   : > { %v2722_v9 = vpop.permute.xlu0 %2721 }
 0x3ba   : > { %v2724_v12 = vunpack.i.h.bf16 %v2722_v9  ;;  %v2712_v4 = vpop.permute.xlu1 %2711  ;;  %1364 = vmatpush.msrb.mxu1 %v1293_v10  ;;  %v2723_v13 = vunpack.i.l.bf16 %v2722_v9 }
 0x3bb   : > { %v2714_v14 = vunpack.i.h.bf16 %v2712_v4  ;;  %v2713_v15 = vunpack.i.l.bf16 %v2712_v4 }
 0x3bc   : > { %1383 = vmatpush.msrb.mxu2 %v2723_v13  ;;  %v1211_v16 = vsel %vm886_vm6, %v2724_v12, %v2683_v57 }
 0x3bd   : > { %1335 = vmatpush.msrb.mxu0 %v1211_v16  ;;  %v1292_v18 = vsel %vm910_vm3, %v2713_v15, %v2714_v14 }
 0x3be   : > { %1365 = vmatpush.msrb.mxu1 %v1292_v18  ;;  %1384 = vmatpush.msrb.mxu2 %v2718_v17 }
 0x3bf   : > { %1336 = vmatpush.msrb.mxu0 %v1210_v20  ;;  %2483 = vmatmul.msk.f32.vlgmr.msrb.gmra.mxu1 %vm1320_vm13, %v1305_v19 }
 0x3c0   : > { %1408 = vmatpush.msra.mxu1 %v2709_v60  ;;  %2485 = vmatpush.msk.msrb.mxu2 %vm1169_vm12, %v1165_v49  ;;  %v1304_v49 = vld [vmem:[%s4108_s14] sm:$0xff] }
 0x3c1   : > { %v2727_v21 = vpop.permute.xlu0 %2726  ;;  %v1547_v60 = vld [vmem:[%s691_s23] sm:$0xff]  ;;  %s3587_s23 = sld [smem:[#allocation6 + $0x2]] }
 0x3c2   : > { %1409 = vmatpush.msra.mxu1 %v2694_v58  ;;  %v2729_v22 = vunpack.i.h.bf16 %v2727_v21  ;;  %v2728_v23 = vunpack.i.l.bf16 %v2727_v21  ;;  %2486 = vmatpush.msk.msrb.mxu2 %vm1169_vm12, %v1163_v52  ;;  %v1318_v25 = vpop.permute.xlu1 %1317 }
 0x3c4   : > { %1410 = vmatpush.msra.mxu1 %v2704_v0  ;;  %2487 = vmatpush.msk.msrb.mxu2 %vm1169_vm12, %v1161_v51  ;;  %v1209_v41 = vsel %vm886_vm6, %v2728_v23, %v2723_v13  ;;  %v1208_v44 = vsel %vm886_vm6, %v2729_v22, %v2718_v17 }
 0x3c5   : > { %1337 = vmatpush.msrb.mxu0 %v1209_v41 }
 0x3c6   : > { %1411 = vmatpush.msra.mxu1 %v2714_v14  ;;  %2488 = vmatpush.msk.msrb.mxu2 %vm1169_vm12, %v1159_v38 }
 0x3c7   : > { %1338 = vmatpush.msrb.mxu0 %v1208_v44  ;;  %1389 = vmatmul.f32.vlgmr.msrb.gmra.mxu2 %v1304_v49 }
 0x3c8   : > { %2484 = vmatmul.msk.f32.gmra.mxu1 %vm1320_vm13, %v1307_v45 }
 0x3c9   : > { %2479 = vmatpush.msk.msrb.mxu0 %vm1166_vm11, %v1164_v55 }
 0x3cb   : > { %2480 = vmatpush.msk.msrb.mxu0 %vm1166_vm11, %v1162_v42  ;;  %v1313_v42 = vpop.permute.xlu2 %1312 }
 0x3cd   : > { %2481 = vmatpush.msk.msrb.mxu0 %vm1166_vm11, %v1160_v30 }
 0x3cf   : > { %2482 = vmatpush.msk.msrb.mxu0 %vm1166_vm11, %v1158_v28  ;;  %1392 = vmatmul.f32.gmra.mxu2 %v1306_v31 }
 0x3d0   : > { %2489 = vmatmul.msk.f32.vlgmr.msra.gmra.mxu1 %vm1320_vm13, %v1305_v19  ;;  %1343 = vmatmul.f32.vlgmr.msrb.gmra.mxu0 %v1304_v49 }
 0x3d8   : > { %2490 = vmatmul.msk.f32.gmra.mxu1 %vm1320_vm13, %v1307_v45  ;;  %1346 = vmatmul.f32.gmra.mxu0 %v1306_v31 }
 0x43c   : > { %v1367_v38 = vpop.f32.mrf.mxu1 }
 0x445   : > { %v1370_v39 = vpop.f32.mrf.mxu1 }
 0x44a   : > { %v1390_v51 = vpop.f32.mrf.mxu2 }
 0x44b   : > { %v1391_v29 = vadd.f32 %v1390_v51, %v1313_v42  ;;  %v1497_v51 = vld [vmem:[%s4110_s16] sm:$0xff] }
 0x44d   : > { %v1413_v52 = vpop.f32.mrf.mxu1  ;;  %v1344_v53 = vpop.f32.mrf.mxu0 }
 0x44e   : > { %v3473_v30 = vadd.f32 %v1413_v52, %v1391_v29  ;;  %v1345_v24 = vadd.f32 %v1344_v53, %v1313_v42 }
 0x450   : > { %v1420_v55 = vmax.f32 %v3473_v30, 0.0  ;;  %v3476_v28 = vadd.f32 %v1367_v38, %v1345_v24 }
 0x452   : > { %v1419_v26 = vmax.f32 %v3476_v28, 0.0  ;;  %v1393_v27 = vpop.f32.mrf.mxu2  ;;  %v1434_v33 = vsel %vm1426_vm14, %v1420_v55, 0.0 }
 0x453   : > { %v1394_v32 = vadd.f32 %v1393_v27, %v1318_v25 }
 0x454   : > { %v1433_v34 = vsel %vm1423_vm15, %v1419_v26, 0.0 }
 0x455   : > { %v1416_v35 = vpop.f32.mrf.mxu1  ;;  %v1347_v36 = vpop.f32.mrf.mxu0  ;;  %v2730_v37 = vpack.i.bf16 %v1434_v33, %v1433_v34  ;;  %v1877_v33 = vstv %s3558_s0  ;;  %v1801_v34 = vstv %s3560_s27  ;;  %s2502_s0 = sld [smem:[#allocation4 + $0x9]] }
 0x456   : > { %v3489_v43 = vadd.f32 %v1416_v35, %v1394_v32  ;;  %v1348_v46 = vadd.f32 %v1347_v36, %v1318_v25  ;;  %v1953_v32 = vstv %s3556_s18  ;;  %s2510_s18 = sld [smem:[#allocation4 + $0xb]] }
 0x457   : > { %2731 = vrot.lane.b32.xlu1 %v2730_v37, %s3014_s3 }
 0x458   : > { %v1422_v47 = vmax.f32 %v3489_v43, 0.0  ;;  %v3493_v50 = vadd.f32 %v1370_v39, %v1348_v46 }
 0x45a   : > { %v1421_v54 = vmax.f32 %v3493_v50, 0.0  ;;  %v1436_v56 = vsel %vm1426_vm14, %v1422_v47, 0.0  ;;  %v2105_v50 = vstv %s3570_s28 }
 0x45c   : > { %v1435_v57 = vsel %vm1423_vm15, %v1421_v54, 0.0  ;;  %s1820_s28 = smul.f32 -0.5, %s2510_s18 }
 0x45d   : > { %v2745_v58 = vpack.i.bf16 %v1436_v56, %v1435_v57  ;;  %v2029_v56 = vstv %s3579_s21  ;;  %s3675_s21 = sld [smem:[#allocation4 + $0xa]] }
 0x45f   : > { %2746 = vrot.lane.b32.xlu2 %v2745_v58, %s3013_s2  ;;  %2736 = vrot.lane.b32.xlu0 %v2745_v58, %s3014_s3  ;;  %s3552_s3 = sld [smem:[#allocation6 + $0x9]] }
 0x460   : > { %2756 = vrot.lane.b32.xlu1 %v2745_v58, %s3012_s1 }
 0x465   : > { %v1649_v52 = vstv %s3552_s3  ;;  %s2523_s3 = sld [smem:[#allocation6 + $0x7]] }
 0x467   : > { %2751 = vrot.lane.b32.xlu2 %v2730_v37, %s3012_s1  ;;  %2741 = vrot.lane.b32.xlu0 %v2730_v37, %s3013_s2  ;;  %s3550_s2 = sld [smem:[#allocation6 + $0xa]] }
 0x468   : > { %2766 = vrot.lane.b32.xlu1 %v2730_v37, %s3015_s26  ;;  %s2515_s1 = sld [smem:[#allocation6 + $0x5]] }
 0x46d   : > { %v1725_v29 = vstv %s3550_s2  ;;  %s2519_s2 = sld [smem:[#allocation6 + $0x6]] }
 0x46f   : > { %1501 = vperm.xlu2 %2593, %v1498_v59   ;;  %2761 = vrot.lane.b32.xlu0 %v2745_v58, %s3015_s26  ;;  %s3554_s26 = sld [smem:[#allocation6 + $0x8]] }
 0x470   : > { %1551 = vperm.xlu1 %2609, %v1547_v60  }
 0x475   : > { %v1572_v53 = vstv %s3554_s26  ;;  %s2498_s26 = sld [smem:[#allocation4 + $0x8]] }
 0x477   : > { %1556 = vperm.xlu0 %2590, %v1548_v61  }
 0x47b   : > { %s1591_s27 = smul.f32 -0.5, %s2498_s26 }
 0x4b9   : > { %v2747_v63 = vpop.permute.xlu2 %2746 }
 0x4ba   : > { %v2749_v6 = vunpack.i.h.bf16 %v2747_v63  ;;  %v2748_v9 = vunpack.i.l.bf16 %v2747_v63 }
 0x4bc   : > { %v1478_v4 = vsel %vm902_vm4, %v2748_v9, %v2749_v6 }
 0x4c1   : > { %v2752_v13 = vpop.permute.xlu2 %2751 }
 0x4c2   : > { %v2754_v19 = vunpack.i.h.bf16 %v2752_v13  ;;  %v2753_v20 = vunpack.i.l.bf16 %v2752_v13 }
 0x4c4   : > { %v1463_v41 = vsel %vm894_vm5, %v2753_v20, %v2754_v19 }
 0x4c9   : > { %v2732_v62 = vpop.permute.xlu1 %2731  ;;  %v1502_v40 = vpop.permute.xlu2 %1501 }
 0x4ca   : > { %v2734_v1 = vunpack.i.h.bf16 %v2732_v62  ;;  %v2733_v2 = vunpack.i.l.bf16 %v2732_v62 }
 0x4cc   : > { %v1491_v12 = vsel %vm910_vm3, %v2733_v2, %v2734_v1  ;;  %v1645_v2 = vstv %s3592_s24  ;;  %s3681_s24 = sld [smem:[#allocation4 + $0xd]] }
 0x4d1   : > { %v2737_v0 = vpop.permute.xlu0 %2736 }
 0x4d2   : > { %v2739_v3 = vunpack.i.h.bf16 %v2737_v0  ;;  %v2738_v5 = vunpack.i.l.bf16 %v2737_v0  ;;  %v2757_v11 = vpop.permute.xlu1 %2756  ;;  %s1972_s26 = smul.f32 -0.5, %s3681_s24 }
 0x4d3   : > { %v2759_v15 = vunpack.i.h.bf16 %v2757_v11  ;;  %v2758_v16 = vunpack.i.l.bf16 %v2757_v11 }
 0x4d4   : > { %1533 = vmatpush.msra.mxu0 %v2739_v3  ;;  %v1492_v10 = vsel %vm910_vm3, %v2738_v5, %v2739_v3  ;;  %vm2200_vm3 = vcmask 1041408  }
 0x4d5   : > { %1513 = vmatpush.msrb.mxu3 %v1492_v10  ;;  %v1464_v22 = vsel %vm894_vm5, %v2758_v16, %v2759_v15 }
 0x4d6   : > { %1534 = vmatpush.msra.mxu0 %v2734_v1  ;;  %v1721_v1 = vstv %s3587_s23  ;;  %s3678_s23 = sld [smem:[#allocation4 + $0xc]] }
 0x4d7   : > { %1514 = vmatpush.msrb.mxu3 %v1491_v12 }
 0x4d8   : > { %1535 = vmatpush.msra.mxu0 %v2749_v6 }
 0x4d9   : > { %v2742_v14 = vpop.permute.xlu0 %2741  ;;  %1515 = vmatpush.msrb.mxu3 %v1478_v4 }
 0x4da   : > { %v2744_v17 = vunpack.i.h.bf16 %v2742_v14  ;;  %v2743_v18 = vunpack.i.l.bf16 %v2742_v14  ;;  %v2767_v23 = vpop.permute.xlu1 %2766 }
 0x4db   : > { %v2769_v45 = vunpack.i.h.bf16 %v2767_v23  ;;  %v2768_v44 = vunpack.i.l.bf16 %v2767_v23  ;;  %v1797_v23 = vstv %s3616_s25  ;;  %s3686_s25 = sld [smem:[#allocation4 + $0xf]] }
 0x4dc   : > { %1536 = vmatpush.msra.mxu0 %v2744_v17  ;;  %v1477_v21 = vsel %vm902_vm4, %v2743_v18, %v2744_v17  ;;  %vm2195_vm4 = vcmask 56320  }
 0x4dd   : > { %1516 = vmatpush.msrb.mxu3 %v1477_v21  ;;  %v1449_v42 = vsel %vm886_vm6, %v2768_v44, %v2769_v45 }
 0x4de   : > { %1537 = vmatpush.msra.mxu0 %v2759_v15 }
 0x4df   : > { %1517 = vmatpush.msrb.mxu3 %v1464_v22 }
 0x4e0   : > { %1538 = vmatpush.msra.mxu0 %v2754_v19 }
 0x4e1   : > { %v2762_v49 = vpop.permute.xlu0 %2761  ;;  %1518 = vmatpush.msrb.mxu3 %v1463_v41  ;;  %v1873_v41 = vstv %s3620_s22  ;;  %s3693_s22 = sld [smem:[#allocation4 + $0x1]]  ;;  %s2124_s18 = smul.f32 -0.5, %s3686_s25 }
 0x4e2   : > { %v2764_v31 = vunpack.i.h.bf16 %v2762_v49  ;;  %v2763_v38 = vunpack.i.l.bf16 %v2762_v49 }
 0x4e4   : > { %1539 = vmatpush.msra.mxu0 %v2764_v31  ;;  %v1450_v39 = vsel %vm886_vm6, %v2763_v38, %v2764_v31  ;;  %vm2280_vm6 = vcmask 1024  }
 0x4e5   : > { %1519 = vmatpush.msrb.mxu3 %v1450_v39 }
 0x4e6   : > { %1540 = vmatpush.msra.mxu0 %v2769_v45 }
 0x4e7   : > { %1520 = vmatpush.msrb.mxu3 %v1449_v42  ;;  %v1949_v42 = vstv %s2515_s1 }
 0x4e8   : > { %2494 = vmatpush.msk.msra.mxu0 %vm1426_vm14, %v1422_v47 }
 0x4e9   : > { %2491 = vmatpush.msk.msrb.mxu3 %vm1423_vm15, %v1421_v54  ;;  %v1568_v54 = vstv %s3574_s29  ;;  %s1668_s29 = smul.f32 -0.5, %s2502_s0 }
 0x4ea   : > { %2495 = vmatpush.msk.msra.mxu0 %vm1426_vm14, %v1420_v55  ;;  %s1653_s0 = smul.f32 -0.5, %s3693_s22  ;;  %s3814_s22 = sld [smem:[#allocation4 + $0x5]] }
 0x4eb   : > { %2492 = vmatpush.msk.msrb.mxu3 %vm1423_vm15, %v1419_v26  ;;  %2496 = vmatmul.msk.f32.vlgmr.msra.gmra.mxu0 %vm1087_vm10, %v1497_v51 }
 0x4ec   : > { %2493 = vmatmul.msk.f32.vlgmr.msrb.gmra.mxu3 %vm1087_vm10, %v1497_v51 }
 0x568   : > { %v1544_v48 = vpop.f32.mrf.mxu0 }
 0x569   : > { %v3565_v30 = vadd.f32 %v1544_v48, %v1502_v40 }
 0x56b   : > { %v1727_v24 = vmul.f32 %v1725_v29, %v3565_v30  ;;  %v1651_v55 = vmul.f32 %v1649_v52, %v3565_v30  ;;  %v1574_v28 = vmul.f32 %v1572_v53, %v3565_v30  ;;  %v1955_v35 = vmul.f32 %v1953_v32, %v3565_v30 }
 0x56c   : > { %v1879_v36 = vmul.f32 %v1877_v33, %v3565_v30  ;;  %v1803_v37 = vmul.f32 %v1801_v34, %v3565_v30  ;;  %v2107_v57 = vmul.f32 %v2105_v50, %v3565_v30  ;;  %v1570_v58 = vmul.f32 %v1568_v54, %v3565_v30 }
 0x56d   : > { %v1778_v25 = vperm.slane %v1727_v24, 2  ;;  %v1702_v26 = vperm.slane %v1651_v55, 1  ;;  %v1626_v27 = vperm.slane %v1574_v28, 0  ;;  %v2006_v43 = vperm.slane %v1955_v35, 5 }
 0x56e   : > { %v1930_v46 = vperm.slane %v1879_v36, 4  ;;  %v1854_v47 = vperm.slane %v1803_v37, 3  ;;  %v2031_v60 = vmul.f32 %v2029_v56, %v3565_v30  ;;  %v2158_v62 = vperm.slane %v2107_v57, 7 }
 0x56f   : > { %1783 = vrot.lane.b32.xlu1 %v1778_v25, %s3016_s20  ;;  %1707 = vrot.lane.b32.xlu2 %v1702_v26, %s3016_s20  ;;  %v1524_v59 = vpop.f32.mrf.mxu3  ;;  %v1606_v63 = vperm.slane %v1570_v58, 0  ;;  %v1723_v3 = vmul.f32 %v1721_v1, %v3565_v30  ;;  %v1647_v6 = vmul.f32 %v1645_v2, %v3565_v30  ;;  %v1799_v49 = vmul.f32 %v1797_v23, %v3565_v30  ;;  %v1552_v58 = vpop.permute.xlu1 %1551 }
 0x570   : > { %1631 = vrot.lane.b32.xlu0 %v1626_v27, %s3016_s20  ;;  %v3600_v61 = vadd.f32 %v1524_v59, %v1502_v40  ;;  %v2082_v0 = vperm.slane %v2031_v60, 6  ;;  %v1875_v44 = vmul.f32 %v1873_v41, %v3565_v30  ;;  %v1951_v40 = vmul.f32 %v1949_v42, %v3565_v30 }
 0x571   : > { %v1759_v9 = vperm.slane %v1723_v3, 2  ;;  %v1683_v11 = vperm.slane %v1647_v6, 1  ;;  %v1835_v31 = vperm.slane %v1799_v49, 3  ;;  %v1559_v59 = vsub.f32 %v1552_v58, %v3183_v7 }
 0x572   : > { %v1650_v5 = vmul.f32 %v1649_v52, %v3600_v61  ;;  %v1878_v12 = vmul.f32 %v1877_v33, %v3600_v61  ;;  %v1573_v4 = vmul.f32 %v1572_v53, %v3600_v61  ;;  %v1726_v13 = vmul.f32 %v1725_v29, %v3600_v61 }
 0x573   : > { %v2106_v17 = vmul.f32 %v2105_v50, %v3600_v61  ;;  %v1802_v18 = vmul.f32 %v1801_v34, %v3600_v61  ;;  %v1954_v19 = vmul.f32 %v1953_v32, %v3600_v61  ;;  %v2030_v45 = vmul.f32 %v2029_v56, %v3600_v61 }
 0x574   : > { %v1701_v10 = vperm.slane %v1650_v5, 1  ;;  %v1929_v14 = vperm.slane %v1878_v12, 4  ;;  %v1625_v15 = vperm.slane %v1573_v4, 0  ;;  %v1777_v16 = vperm.slane %v1726_v13, 2 }
 0x575   : > { %v2157_v20 = vperm.slane %v2106_v17, 7  ;;  %v1853_v21 = vperm.slane %v1802_v18, 3  ;;  %v2005_v22 = vperm.slane %v1954_v19, 5  ;;  %v2081_v38 = vperm.slane %v2030_v45, 6 }
 0x576   : > { %v1911_v39 = vperm.slane %v1875_v44, 4  ;;  %v1722_v51 = vmul.f32 %v1721_v1, %v3600_v61  ;;  %v1569_v48 = vmul.f32 %v1568_v54, %v3600_v61  ;;  %v1987_v52 = vperm.slane %v1951_v40, 5 }
 0x577   : > { %2011 = vrot.lane.b32.xlu1 %v2006_v43, %s3016_s20  ;;  %1935 = vrot.lane.b32.xlu2 %v1930_v46, %s3016_s20  ;;  %v1950_v24 = vmul.f32 %v1949_v42, %v3600_v61  ;;  %v1646_v55 = vmul.f32 %v1645_v2, %v3600_v61  ;;  %v1798_v28 = vmul.f32 %v1797_v23, %v3600_v61  ;;  %v2025_v32 = vstv %s2519_s2  ;;  %s1744_s2 = smul.f32 -0.5, %s3675_s21 }
 0x578   : > { %1859 = vrot.lane.b32.xlu0 %v1854_v47, %s3016_s20  ;;  %v1758_v29 = vperm.slane %v1722_v51, 2  ;;  %v1605_v53 = vperm.slane %v1569_v48, 0  ;;  %v2027_v33 = vmul.f32 %v2025_v32, %v3565_v30  ;;  %v1874_v34 = vmul.f32 %v1873_v41, %v3600_v61 }
 0x579   : > { %v1986_v25 = vperm.slane %v1950_v24, 5  ;;  %v1682_v26 = vperm.slane %v1646_v55, 1  ;;  %v1834_v27 = vperm.slane %v1798_v28, 3  ;;  %v2026_v35 = vmul.f32 %v2025_v32, %v3600_v61 }
 0x57a   : > { %v2063_v36 = vperm.slane %v2027_v33, 6  ;;  %v1910_v37 = vperm.slane %v1874_v34, 4  ;;  %v2101_v46 = vstv %s2523_s3  ;;  %v1560_v60 = vsub.f32 %v1552_v58, %v3185_v8  ;;  %s1896_s3 = smul.f32 -0.5, %s3678_s23 }
 0x57b   : > { %v2062_v43 = vperm.slane %v2026_v35, 6  ;;  %v2102_v47 = vmul.f32 %v2101_v46, %v3600_v61  ;;  %v2103_v50 = vmul.f32 %v2101_v46, %v3565_v30  ;;  %v1557_v61 = vpop.permute.xlu0 %1556  ;;  %v3667_v30 = vmul.f32 %v1559_v59, %v1559_v59 }
 0x57c   : > { %v1561_v1 = vsub.f32 %v1557_v61, %v3183_v7  ;;  %v1562_v2 = vsub.f32 %v1557_v61, %v3185_v8  ;;  %v1821_v3 = vstv %s1820_s28  ;;  %v1897_v48 = vstv %s1896_s3  ;;  %s3737_s28 = sld [smem:[#allocation4 + $0x2]] }
 0x57d   : > { %v2138_v54 = vperm.slane %v2102_v47, 7  ;;  %v2139_v56 = vperm.slane %v2103_v50, 7  ;;  %v1822_v7 = vmul.f32 %v1821_v3, %v3667_v30  ;;  %v1973_v24 = vstv %s1972_s26  ;;  %s3942_s26 = sld [smem:[#allocation4 + $0x6]] }
 0x57e   : > { %v3688_v8 = vmul.f32 %v1562_v2, %v1562_v2  ;;  %v3725_v34 = vstv %s1653_s0  ;;  %v1898_v59 = vmul.f32 %v1897_v48, %v3667_v30  ;;  %s3017_s0 = smov 120  }
 0x57f   : > { %2163 = vrot.lane.b32.xlu2 %v2158_v62, %s3016_s20  ;;  %1611 = vrot.lane.b32.xlu1 %v1606_v63, %s3016_s20  ;;  %v3669_v63 = vmul.f32 %v1560_v60, %v1560_v60  ;;  %v1826_v17 = vmul.f32 1.442695, %v1822_v7 }
 0x580   : > { %2087 = vrot.lane.b32.xlu0 %v2082_v0, %s3016_s20  ;;  %v1592_v0 = vstv %s1591_s27  ;;  %s3727_s27 = sld [smem:[#allocation4 + $0x4]] }
 0x581   : > { %v1593_v5 = vmul.f32 %v1592_v0, %v3667_v30  ;;  %v1594_v6 = vmul.f32 %v1592_v0, %v3669_v63  ;;  %v1823_v12 = vmul.f32 %v1821_v3, %v3669_v63  ;;  %v1596_v18 = vmul.f32 %v1592_v0, %v3688_v8 }
 0x582   : > { %v1899_v60 = vmul.f32 %v1897_v48, %v3669_v63  ;;  %s1729_s23 = smul.f32 -0.5, %s3737_s28  ;;  %s4076_s28 = sld [smem:[#allocation7]] }
 0x583   : > { %v1597_v4 = vmul.f32 1.442695, %v1593_v5  ;;  %v1828_v19 = vmul.f32 1.442695, %v1823_v12  ;;  %v1974_v12 = vmul.f32 %v1973_v24, %v3667_v30 }
 0x585   : > { %2790 = vpow2.f32 %v1597_v4 }
 0x586   : > { %s1881_s21 = smul.f32 -0.5, %s3727_s27  ;;  %s2527_s27 = sld [smem:[#allocation7 + $0x1]] }
 0x587   : > { %1764 = vrot.lane.b32.xlu2 %v1759_v9, %s3016_s20  ;;  %1705 = vrot.lane.b32.xlu1 %v1701_v10, %s3016_s20  ;;  %v1669_v9 = vstv %s1668_s29  ;;  %v3683_v10 = vmul.f32 %v1561_v1, %v1561_v1  ;;  %s3749_s29 = sld [smem:[#allocation4 + $0x7]] }
 0x588   : > { %1688 = vrot.lane.b32.xlu0 %v1683_v11, %s3016_s20  ;;  %v1670_v13 = vmul.f32 %v1669_v9, %v3667_v30 }
 0x589   : > { %v1672_v45 = vmul.f32 %v1669_v9, %v3683_v10  ;;  %v1900_v2 = vmul.f32 %v1897_v48, %v3683_v10 }
 0x58b   : > { %v3717_v55 = vpop.eup %2790  ;;  %v1678_v28 = vmul.f32 1.442695, %v1672_v45 }
 0x58d   : > { %s2109_s24 = smul.f32 -0.5, %s3749_s29 }
 0x58f   : > { %1933 = vrot.lane.b32.xlu1 %v1929_v14, %s3016_s20  ;;  %1629 = vrot.lane.b32.xlu2 %v1625_v15, %s3016_s20  ;;  %v1599_v14 = vmul.f32 1.442695, %v1594_v6  ;;  %v1671_v15 = vmul.f32 %v1669_v9, %v3669_v63 }
 0x590   : > { %1781 = vrot.lane.b32.xlu0 %v1777_v16, %s3016_s20  ;;  %v1595_v16 = vmul.f32 %v1592_v0, %v3683_v10 }
 0x591   : > { %2792 = vpow2.f32 %v1599_v14  ;;  %v1676_v23 = vmul.f32 1.442695, %v1671_v15  ;;  %v1975_v15 = vmul.f32 %v1973_v24, %v3669_v63 }
 0x592   : > { %v1601_v49 = vmul.f32 1.442695, %v1595_v16  ;;  %2794 = vpow2.f32 %v1826_v17  ;;  %v1902_v17 = vmul.f32 1.442695, %v1898_v59 }
 0x593   : > { %2796 = vpow2.f32 %v1828_v19  ;;  %v1976_v19 = vmul.f32 %v1973_v24, %v3683_v10 }
 0x597   : > { %2161 = vrot.lane.b32.xlu1 %v2157_v20, %s3016_s20  ;;  %1857 = vrot.lane.b32.xlu2 %v1853_v21, %s3016_s20  ;;  %v1824_v20 = vmul.f32 %v1821_v3, %v3683_v10  ;;  %v1674_v21 = vmul.f32 1.442695, %v1670_v13 }
 0x598   : > { %2009 = vrot.lane.b32.xlu0 %v2005_v22, %s3016_s20  ;;  %v1825_v22 = vmul.f32 %v1821_v3, %v3688_v8  ;;  %v1901_v3 = vmul.f32 %v1897_v48, %v3688_v8 }
 0x599   : > { %v1830_v51 = vmul.f32 1.442695, %v1824_v20  ;;  %2798 = vpow2.f32 %v1674_v21 }
 0x59a   : > { %2800 = vpow2.f32 %v1676_v23  ;;  %v1908_v23 = vmul.f32 1.442695, %v1901_v3 }
 0x59b   : > { %2802 = vpow2.f32 %v1601_v49 }
 0x59f   : > { %1840 = vrot.lane.b32.xlu1 %v1835_v31, %s3016_s20  ;;  %2085 = vrot.lane.b32.xlu2 %v2081_v38, %s3016_s20  ;;  %v1603_v31 = vmul.f32 1.442695, %v1596_v18  ;;  %v1673_v38 = vmul.f32 %v1669_v9, %v3688_v8  ;;  %v1904_v18 = vmul.f32 1.442695, %v1899_v60  ;;  %v1658_v60 = vmul.f32 %v3725_v34, %v3688_v8 }
 0x5a0   : > { %1916 = vrot.lane.b32.xlu0 %v1911_v39, %s3016_s20  ;;  %v1745_v39 = vstv %s1744_s2  ;;  %s3873_s2 = sld [smem:[#allocation4 + $0x3]] }
 0x5a1   : > { %2804 = vpow2.f32 %v1603_v31  ;;  %v1680_v32 = vmul.f32 1.442695, %v1673_v38  ;;  %v1748_v50 = vmul.f32 %v1745_v39, %v3683_v10 }
 0x5a2   : > { %2806 = vpow2.f32 %v1830_v51  ;;  %v1978_v51 = vmul.f32 1.442695, %v1974_v12 }
 0x5a3   : > { %v1754_v13 = vmul.f32 1.442695, %v1748_v50 }
 0x5a6   : > { %s1805_s3 = smul.f32 -0.5, %s3873_s2 }
 0x5a7   : > { %1762 = vrot.lane.b32.xlu1 %v1758_v29, %s3016_s20  ;;  %1992 = vrot.lane.b32.xlu2 %v1987_v52, %s3016_s20  ;;  %v1832_v52 = vmul.f32 1.442695, %v1825_v22  ;;  %v1906_v22 = vmul.f32 1.442695, %v1900_v2 }
 0x5a8   : > { %1609 = vrot.lane.b32.xlu0 %v1605_v53, %s3016_s20 }
 0x5a9   : > { %2808 = vpow2.f32 %v1832_v52 }
 0x5aa   : > { %2810 = vpow2.f32 %v1678_v28  ;;  %v1656_v28 = vmul.f32 %v3725_v34, %v3669_v63 }
 0x5ab   : > { %2812 = vpow2.f32 %v1680_v32 }
 0x5af   : > { %1990 = vrot.lane.b32.xlu1 %v1986_v25, %s3016_s20  ;;  %1686 = vrot.lane.b32.xlu2 %v1682_v26, %s3016_s20  ;;  %v3720_v26 = vstv %s2124_s18  ;;  %s2033_s18 = smul.f32 -0.5, %s3942_s26 }
 0x5b0   : > { %1838 = vrot.lane.b32.xlu0 %v1834_v27, %s3016_s20  ;;  %v3722_v27 = vpop.eup %2792  ;;  %v2126_v45 = vmul.f32 %v3720_v26, %v3667_v30  ;;  %v2127_v31 = vmul.f32 %v3720_v26, %v3669_v63  ;;  %v2128_v38 = vmul.f32 %v3720_v26, %v3683_v10  ;;  %v2129_v48 = vmul.f32 %v3720_v26, %v3688_v8 }
 0x5b1   : > { %v3729_v35 = vpop.eup %2794  ;;  %v1657_v26 = vmul.f32 %v3725_v34, %v3683_v10 }
 0x5b2   : > { %v3733_v46 = vpop.eup %2796  ;;  %v2132_v50 = vmul.f32 1.442695, %v2127_v31  ;;  %v2136_v59 = vmul.f32 1.442695, %v2129_v48 }
 0x5b7   : > { %2068 = vrot.lane.b32.xlu1 %v2063_v36, %s3016_s20  ;;  %1914 = vrot.lane.b32.xlu2 %v1910_v37, %s3016_s20  ;;  %v1746_v37 = vmul.f32 %v1745_v39, %v3667_v30 }
 0x5b8   : > { %2066 = vrot.lane.b32.xlu0 %v2062_v43, %s3016_s20  ;;  %v1747_v43 = vmul.f32 %v1745_v39, %v3669_v63 }
 0x5b9   : > { %v1750_v9 = vmul.f32 1.442695, %v1746_v37 }
 0x5ba   : > { %v1752_v7 = vmul.f32 1.442695, %v1747_v43 }
 0x5bf   : > { %2142 = vrot.lane.b32.xlu2 %v2138_v54, %s3016_s20  ;;  %v1749_v54 = vmul.f32 %v1745_v39, %v3688_v8 }
 0x5c0   : > { %2144 = vrot.lane.b32.xlu0 %v2139_v56, %s3016_s20  ;;  %s3671_s20 = sld [smem:[#allocation4 + $0xe]]  ;;  %v3739_v56 = vpop.eup %2798 }
 0x5c1   : > { %v3743_v61 = vpop.eup %2800  ;;  %v1756_v14 = vmul.f32 1.442695, %v1749_v54  ;;  %v2134_v54 = vmul.f32 1.442695, %v2128_v38 }
 0x5c2   : > { %v3751_v5 = vpop.eup %2802 }
 0x5c3   : > { %v3756_v4 = vpop.eup %2804 }
 0x5c4   : > { %v3759_v16 = vpop.eup %2806 }
 0x5c5   : > { %v3764_v20 = vpop.eup %2808 }
 0x5c6   : > { %s2048_s1 = smul.f32 -0.5, %s3671_s20  ;;  %s3762_s20 = sld [smem:[#allocation4]]  ;;  %v3770_v49 = vpop.eup %2810 }
 0x5c7   : > { %v3778_v39 = vpop.eup %2812 }
 0x5c8   : > { %v2049_v41 = vstv %s2048_s1  ;;  %s1957_s1 = smul.f32 -0.5, %s3814_s22 }
 0x5c9   : > { %v3661_v57 = vpop.permute.xlu2 %1707  ;;  %v2050_v40 = vmul.f32 %v2049_v41, %v3667_v30  ;;  %v2051_v53 = vmul.f32 %v2049_v41, %v3669_v63  ;;  %v2052_v25 = vmul.f32 %v2049_v41, %v3683_v10  ;;  %v2053_v33 = vmul.f32 %v2049_v41, %v3688_v8 }
 0x5ca   : > { %v1977_v41 = vmul.f32 %v1973_v24, %v3688_v8  ;;  %v1655_v24 = vmul.f32 %v3725_v34, %v3667_v30 }
 0x5cb   : > { %v2054_v36 = vmul.f32 1.442695, %v2050_v40  ;;  %v2056_v47 = vmul.f32 1.442695, %v2051_v53  ;;  %v2058_v58 = vmul.f32 1.442695, %v2052_v25 }
 0x5cc   : > { %v2060_v1 = vmul.f32 1.442695, %v2053_v33  ;;  %v1980_v40 = vmul.f32 1.442695, %v1975_v15  ;;  %v1982_v53 = vmul.f32 1.442695, %v1976_v19  ;;  %v3820_v19 = vstv %s2109_s24 }
 0x5cd   : > { %2814 = vpow2.f32 %v2054_v36  ;;  %v1984_v33 = vmul.f32 1.442695, %v1977_v41  ;;  %v1882_v36 = vstv %s1881_s21  ;;  %v1659_v3 = vmul.f32 1.442695, %v1655_v24  ;;  %s1576_s25 = smul.f32 -0.5, %s3762_s20  ;;  %4132 = vst [vmem:[#allocation17_spill] sm:$0xff] %v3820_v19  ;;  %s701_s21 = scalar_lea.vmem %s4113_s19, %s3510_s30 }
 0x5ce   : > { %2816 = vpow2.f32 %v2056_v47  ;;  %v2130_v47 = vmul.f32 1.442695, %v2126_v45  ;;  %v1885_v15 = vmul.f32 %v1882_v36, %v3683_v10  ;;  %v1665_v41 = vmul.f32 1.442695, %v1658_v60 }
 0x5cf   : > { %2818 = vpow2.f32 %v2058_v58  ;;  %v1577_v24 = vstv %s1576_s25  ;;  %v2111_v60 = vmul.f32 %v3820_v19, %v3667_v30  ;;  %s4150_s25 = sld [smem:[#allocation28_spill]] }
 0x5d0   : > { %2820 = vpow2.f32 %v2060_v1  ;;  %v1730_v1 = vstv %s1729_s23 }
 0x5d1   : > { %v3665_v62 = vpop.permute.xlu2 %1935  ;;  %2822 = vpow2.f32 %v1750_v9  ;;  %v1661_v9 = vmul.f32 1.442695, %v1656_v28  ;;  %v1732_v45 = vmul.f32 %v1730_v1, %v3669_v63  ;;  %v1733_v31 = vmul.f32 %v1730_v1, %v3683_v10 }
 0x5d2   : > { %2824 = vpow2.f32 %v1752_v7  ;;  %v1883_v7 = vmul.f32 %v1882_v36, %v3667_v30  ;;  %v1734_v48 = vmul.f32 %v1730_v1, %v3688_v8 }
 0x5d3   : > { %v3783_v52 = vpop.eup %2814  ;;  %2826 = vpow2.f32 %v1754_v13  ;;  %v3810_v13 = vmul.f32 1.442695, %v1657_v26 }
 0x5d4   : > { %v3789_v25 = vpop.eup %2816  ;;  %2828 = vpow2.f32 %v1756_v14  ;;  %v1884_v14 = vmul.f32 %v1882_v36, %v3669_v63 }
 0x5d5   : > { %4129 = vst [vmem:[#allocation14_spill] sm:$0xff] %v3789_v25  ;;  %v3796_v37 = vpop.eup %2818  ;;  %2830 = vpow2.f32 %v1902_v17  ;;  %v1886_v17 = vmul.f32 %v1882_v36, %v3688_v8  ;;  %v1578_v25 = vmul.f32 %v1577_v24, %v3667_v30  ;;  %s696_s22 = scalar_lea.vmem %s4150_s25, %s3510_s30 }
 0x5d6   : > { %v3800_v58 = vpop.eup %2820  ;;  %2832 = vpow2.f32 %v1904_v18  ;;  %v1731_v18 = vmul.f32 %v1730_v1, %v3667_v30  ;;  %v3835_v36 = vmul.f32 1.442695, %v1884_v14  ;;  %v3853_v14 = vmul.f32 1.442695, %v1732_v45 }
 0x5d7   : > { %4131 = vst [vmem:[#allocation16_spill] sm:$0xff] %v3800_v58  ;;  %v3804_v2 = vpop.eup %2822  ;;  %2834 = vpow2.f32 %v1906_v22  ;;  %v3869_v45 = vmul.f32 1.442695, %v2111_v60  ;;  %v3889_v60 = vmul.f32 1.442695, %v1578_v25 }
 0x5d8   : > { %v3808_v12 = vpop.eup %2824  ;;  %2836 = vpow2.f32 %v1908_v23  ;;  %v3847_v1 = vmul.f32 1.442695, %v1731_v18 }
 0x5d9   : > { %v3690_v11 = vpop.permute.xlu2 %2163  ;;  %v3816_v34 = vpop.eup %2826  ;;  %2838 = vpow2.f32 %v1978_v51  ;;  %v3830_v51 = vmul.f32 1.442695, %v1883_v7  ;;  %v2113_v7 = vmul.f32 %v3820_v19, %v3683_v10  ;;  %4135 = vst [vmem:[#allocation20_spill] sm:$0xff] %v3869_v45  ;;  %v3881_v19 = vmul.f32 %v1577_v24, %v3688_v8 }
 0x5da   : > { %v3822_v22 = vpop.eup %2828  ;;  %2840 = vpow2.f32 %v1980_v40  ;;  %v3837_v40 = vmul.f32 1.442695, %v1885_v15  ;;  %v3855_v15 = vmul.f32 1.442695, %v1733_v31  ;;  %v1580_v31 = vmul.f32 %v1577_v24, %v3683_v10 }
 0x5db   : > { %v3828_v38 = vpop.eup %2830  ;;  %2842 = vpow2.f32 %v1982_v53  ;;  %v3845_v53 = vmul.f32 1.442695, %v1886_v17  ;;  %v3863_v17 = vmul.f32 %v1577_v24, %v3669_v63 }
 0x5dc   : > { %v3833_v28 = vpop.eup %2832  ;;  %2844 = vpow2.f32 %v1984_v33  ;;  %v3902_v25 = vmul.f32 1.442695, %v1580_v31 }
 0x5dd   : > { %2846 = vpow2.f32 %v2130_v47  ;;  %v3860_v47 = vmul.f32 1.442695, %v1734_v48  ;;  %4134 = vst [vmem:[#allocation19_spill] sm:$0xff] %v3863_v17  ;;  %v3878_v48 = vmul.f32 1.442695, %v2113_v7 }
 0x5de   : > { %2848 = vpow2.f32 %v2132_v50  ;;  %4138 = vst [vmem:[#allocation23_spill] sm:$0xff] %v3902_v25 }
 0x5df   : > { %2850 = vpow2.f32 %v2134_v54  ;;  %4136 = vst [vmem:[#allocation21_spill] sm:$0xff] %v3878_v48 }
 0x5e0   : > { %2852 = vpow2.f32 %v2136_v59 }
 0x5e1   : > { %v3707_v44 = vpop.permute.xlu1 %1783  ;;  %v3714_v29 = vpop.permute.xlu2 %1764  ;;  %2854 = vpow2.f32 %v1659_v3 }
 0x5e2   : > { %v3711_v42 = vpop.permute.xlu0 %1631  ;;  %4128 = vst [vmem:[#allocation13_spill] sm:$0xff] %v3714_v29  ;;  %v3841_v29 = vpop.eup %2834  ;;  %2856 = vpow2.f32 %v1661_v9 }
 0x5e3   : > { %v3851_v33 = vpop.eup %2836  ;;  %2858 = vpow2.f32 %v3810_v13 }
 0x5e4   : > { %v3858_v58 = vpop.eup %2838  ;;  %2860 = vpow2.f32 %v1665_v41 }
 0x5e5   : > { %v3865_v18 = vpop.eup %2840  ;;  %2862 = vpow2.f32 %v3830_v51 }
 0x5e6   : > { %2864 = vpow2.f32 %v3835_v36 }
 0x5e7   : > { %2866 = vpow2.f32 %v3837_v40 }
 0x5e8   : > { %2868 = vpow2.f32 %v3845_v53 }
 0x5e9   : > { %v3745_v0 = vpop.permute.xlu1 %2011  ;;  %v3766_v21 = vpop.permute.xlu2 %1629  ;;  %2870 = vpow2.f32 %v3847_v1 }
 0x5ea   : > { %v3753_v6 = vpop.permute.xlu0 %1859  ;;  %2872 = vpow2.f32 %v3853_v14 }
 0x5f1   : > { %v3791_v32 = vpop.permute.xlu1 %1611  ;;  %v3824_v23 = vpop.permute.xlu2 %1857 }
 0x5f2   : > { %4130 = vst [vmem:[#allocation15_spill] sm:$0xff] %v3791_v32  ;;  %v3798_v43 = vpop.permute.xlu0 %2087 }
 0x5f9   : > { %v1706_v26 = vpop.permute.xlu1 %1705 }
 0x5fa   : > { %v3843_v32 = vpop.permute.xlu0 %1688  ;;  %v1709_v50 = vsel %vm1613_vm0, %v1706_v26, %v3661_v57  ;;  %v1712_v54 = vmul.f32 %v3739_v56, %v1706_v26  ;;  %v1633_v57 = vsel %vm1613_vm0, %v3766_v21, %v3711_v42  ;;  %v1714_v59 = vmul.f32 %v3770_v49, %v1706_v26  ;;  %v2086_v49 = vpop.permute.xlu2 %2085 }
 0x5fb   : > { %4133 = vst [vmem:[#allocation18_spill] sm:$0xff] %v3843_v32  ;;  %v3875_v32 = vpop.eup %2842  ;;  %v1636_v56 = vmul.f32 %v3717_v55, %v3766_v21  ;;  %v1713_v3 = vmul.f32 %v3743_v61, %v1709_v50  ;;  %v1715_v24 = vmul.f32 %v3778_v39, %v1709_v50  ;;  %v1638_v42 = vmul.f32 %v3751_v5, %v3766_v21 }
 0x5fc   : > { %v3883_v17 = vpop.eup %2844  ;;  %v3904_v26 = vstv %s1957_s1  ;;  %v1637_v55 = vmul.f32 %v3722_v27, %v1633_v57  ;;  %v1639_v61 = vmul.f32 %v3756_v4, %v1633_v57  ;;  %v1861_v39 = vsel %vm1613_vm0, %v3824_v23, %v3753_v6 }
 0x5fd   : > { %v3891_v45 = vpop.eup %2846  ;;  %v1716_v13 = vadd.f32 %v1712_v54, %v1636_v56  ;;  %v1718_v21 = vadd.f32 %v1714_v59, %v1638_v42  ;;  %v1864_v59 = vmul.f32 %v3729_v35, %v3824_v23  ;;  %v2092_v36 = vmul.f32 %v3783_v52, %v2086_v49 }
 0x5fe   : > { %v3898_v7 = vpop.eup %2848  ;;  %v1717_v4 = vadd.f32 %v1713_v3, %v1637_v55  ;;  %v1719_v57 = vadd.f32 %v1715_v24, %v1639_v61  ;;  %v1867_v3 = vmul.f32 %v3764_v20, %v1861_v39  ;;  %v2089_v20 = vsel %vm1613_vm0, %v2086_v49, %v3798_v43 }
 0x5ff   : > { %4137 = vst [vmem:[#allocation22_spill] sm:$0xff] %v3898_v7  ;;  %v3906_v48 = vpop.eup %2850  ;;  %2874 = vpow2.f32 %v3855_v15  ;;  %v1961_v14 = vmul.f32 %v3904_v26, %v3683_v10  ;;  %v4142_v15 = vld [vmem:[#allocation19_spill] sm:$0xff] }
 0x600   : > { %v3913_v5 = vpop.eup %2852  ;;  %2876 = vpow2.f32 %v3860_v47 }
 0x601   : > { %v1934_v9 = vpop.permute.xlu1 %1933  ;;  %v3919_v27 = vpop.eup %2854 }
 0x602   : > { %v1782_v50 = vpop.permute.xlu0 %1781  ;;  %v3923_v54 = vpop.eup %2856  ;;  %v1937_v35 = vsel %vm1613_vm0, %v1934_v9, %v3665_v62  ;;  %v1942_v51 = vmul.f32 %v3841_v29, %v1934_v9  ;;  %v3948_v62 = vstv %s1805_s3 }
 0x603   : > { %v1785_v41 = vsel %vm1613_vm0, %v1782_v50, %v3707_v44  ;;  %v1788_v31 = vmul.f32 %v3804_v2, %v1782_v50  ;;  %v1790_v7 = vmul.f32 %v3816_v34, %v1782_v50  ;;  %v1866_v44 = vmul.f32 %v3759_v16, %v3824_v23  ;;  %v3930_v34 = vpop.eup %2858 }
 0x604   : > { %v1789_v25 = vmul.f32 %v3808_v12, %v1785_v41  ;;  %v1791_v6 = vmul.f32 %v3822_v22, %v1785_v41  ;;  %v3934_v12 = vpop.eup %2860  ;;  %v1865_v16 = vmul.f32 %v3733_v46, %v1861_v39  ;;  %v1943_v61 = vmul.f32 %v3851_v33, %v1937_v35 }
 0x605   : > { %v1792_v56 = vadd.f32 %v1788_v31, %v1716_v13  ;;  %v1794_v2 = vadd.f32 %v1790_v7, %v1718_v21  ;;  %v1940_v7 = vmul.f32 %v3828_v38, %v1934_v9  ;;  %v3952_v13 = vpop.permute.xlu2 %1992  ;;  %v3958_v53 = vpop.eup %2862  ;;  %v2094_v50 = vmul.f32 %v3796_v37, %v2086_v49 }
 0x606   : > { %v1793_v24 = vadd.f32 %v1789_v25, %v1717_v4  ;;  %v1795_v42 = vadd.f32 %v1791_v6, %v1719_v57  ;;  %v1941_v52 = vmul.f32 %v3833_v28, %v1937_v35  ;;  %v3963_v41 = vpop.eup %2864  ;;  %v4141_v35 = vld [vmem:[#allocation20_spill] sm:$0xff] }
 0x607   : > { %v1868_v22 = vadd.f32 %v1864_v59, %v1792_v56  ;;  %v1870_v55 = vadd.f32 %v1866_v44, %v1794_v2  ;;  %2878 = vpow2.f32 %v4141_v35 }
 0x608   : > { %v1871_v23 = vadd.f32 %v1867_v3, %v1795_v42  ;;  %v1869_v46 = vadd.f32 %v1865_v16, %v1793_v24  ;;  %v1584_v16 = vmul.f32 1.442695, %v4142_v15  ;;  %2880 = vpow2.f32 %v3889_v60 }
 0x609   : > { %v2162_v25 = vpop.permute.xlu1 %2161  ;;  %v1944_v38 = vadd.f32 %v1940_v7, %v1868_v22  ;;  %v1946_v40 = vadd.f32 %v1942_v51, %v1870_v55  ;;  %v4140_v22 = vld [vmem:[#allocation14_spill] sm:$0xff]  ;;  %v1962_v7 = vmul.f32 %v3904_v26, %v3688_v8  ;;  %v2034_v51 = vstv %s2033_s18 }
 0x60a   : > { %v2010_v39 = vpop.permute.xlu0 %2009  ;;  %v1947_v21 = vadd.f32 %v1943_v61, %v1871_v23  ;;  %v1945_v37 = vadd.f32 %v1941_v52, %v1869_v46  ;;  %v2093_v55 = vmul.f32 %v4140_v22, %v2089_v20  ;;  %v1588_v23 = vmul.f32 1.442695, %v3881_v19 }
 0x60b   : > { %v2013_v43 = vsel %vm1613_vm0, %v2010_v39, %v3745_v0  ;;  %v2016_v29 = vmul.f32 %v3858_v58, %v2010_v39  ;;  %v2018_v9 = vmul.f32 %v3875_v32, %v2010_v39  ;;  %v2165_v0 = vsel %vm1613_vm0, %v2162_v25, %v3690_v11  ;;  %v3968_v32 = vpop.eup %2866  ;;  %v4139_v58 = vld [vmem:[#allocation16_spill] sm:$0xff]  ;;  %v4144_v39 = vld [vmem:[#allocation21_spill] sm:$0xff] }
 0x60c   : > { %v2019_v33 = vmul.f32 %v3883_v17, %v2013_v43  ;;  %v2017_v31 = vmul.f32 %v3865_v18, %v2013_v43  ;;  %v2095_v6 = vmul.f32 %v4139_v58, %v2089_v20  ;;  %v3972_v28 = vpop.eup %2868  ;;  %v2168_v17 = vmul.f32 %v3891_v45, %v2162_v25 }
 0x60d   : > { %v2020_v4 = vadd.f32 %v2016_v29, %v1944_v38  ;;  %v2022_v57 = vadd.f32 %v2018_v9, %v1946_v40  ;;  %v2170_v18 = vmul.f32 %v3906_v48, %v2162_v25  ;;  %v2171_v56 = vmul.f32 %v3913_v5, %v2165_v0  ;;  %v3997_v47 = vpop.eup %2870  ;;  %v1687_v25 = vpop.permute.xlu2 %1686  ;;  %v4145_v29 = vld [vmem:[#allocation22_spill] sm:$0xff] }
 0x60e   : > { %v2023_v49 = vadd.f32 %v2019_v33, %v1947_v21  ;;  %v1959_v11 = vmul.f32 %v3904_v26, %v3667_v30  ;;  %v2021_v3 = vadd.f32 %v2017_v31, %v1945_v37  ;;  %v1960_v5 = vmul.f32 %v3904_v26, %v3669_v63  ;;  %v4008_v38 = vpop.eup %2872 }
 0x60f   : > { %v2098_v59 = vadd.f32 %v2094_v50, %v2022_v57  ;;  %v2096_v44 = vadd.f32 %v2092_v36, %v2020_v4  ;;  %v1807_v20 = vmul.f32 %v3948_v62, %v3667_v30  ;;  %v4143_v36 = vld [vmem:[#allocation23_spill] sm:$0xff]  ;;  %v1809_v19 = vmul.f32 %v3948_v62, %v3683_v10  ;;  %v4013_v43 = vpop.eup %2874 }
 0x610   : > { %v2099_v2 = vadd.f32 %v2095_v6, %v2023_v49  ;;  %2882 = vpow2.f32 %v4143_v36  ;;  %v2097_v46 = vadd.f32 %v2093_v55, %v2021_v3  ;;  %v1963_v61 = vmul.f32 1.442695, %v1959_v11  ;;  %v4019_v21 = vpop.eup %2876  ;;  %v4146_v3 = vld [vmem:[#allocation17_spill] sm:$0xff] }
 0x611   : > { %v3981_v24 = vpop.permute.xlu1 %1840  ;;  %v2174_v1 = vadd.f32 %v2170_v18, %v2098_v59  ;;  %v2172_v42 = vadd.f32 %v2168_v17, %v2096_v44  ;;  %2884 = vpow2.f32 %v4144_v39  ;;  %v1965_v60 = vmul.f32 1.442695, %v1960_v5  ;;  %v4021_v31 = vpop.eup %2878 }
 0x612   : > { %v3984_v45 = vpop.permute.xlu0 %1916  ;;  %v2175_v48 = vadd.f32 %v2171_v56, %v2099_v2  ;;  %v1967_v40 = vmul.f32 1.442695, %v1961_v14  ;;  %v1808_v26 = vmul.f32 %v3948_v62, %v3669_v63  ;;  %v2169_v9 = vmul.f32 %v4145_v29, %v2165_v0  ;;  %v2881_v37 = vpop.eup %2880  ;;  %v4149_v29 = vld [vmem:[#allocation13_spill] sm:$0xff] }
 0x613   : > { %2219 = vrot.lane.b32.xlu1 %v2174_v1, %s3017_s0  ;;  %2215 = vrot.lane.b32.xlu0 %v2172_v42, %s3017_s0  ;;  %2886 = vpow2.f32 %v1584_v16  ;;  %v1810_v50 = vmul.f32 %v3948_v62, %v3688_v8  ;;  %v2035_v52 = vmul.f32 %v2034_v51, %v3667_v30  ;;  %v1811_v33 = vmul.f32 1.442695, %v1807_v20 }
 0x614   : > { %2221 = vrot.lane.b32.xlu2 %v2175_v48, %s3017_s0  ;;  %2888 = vpow2.f32 %v1588_v23  ;;  %v2173_v57 = vadd.f32 %v2169_v9, %v2097_v46  ;;  %v1969_v58 = vmul.f32 1.442695, %v1962_v7  ;;  %v1815_v6 = vmul.f32 1.442695, %v1809_v19  ;;  %v4148_v23 = vld [vmem:[#allocation18_spill] sm:$0xff] }
 0x615   : > { %2890 = vpow2.f32 %v1963_v61  ;;  %v1813_v0 = vmul.f32 1.442695, %v1808_v26  ;;  %v2036_v17 = vmul.f32 %v2034_v51, %v3669_v63  ;;  %v2037_v62 = vmul.f32 %v2034_v51, %v3683_v10  ;;  %v4147_v10 = vld [vmem:[#allocation15_spill] sm:$0xff]  ;;  %v1915_v7 = vpop.permute.xlu2 %1914 }
 0x616   : > { %2892 = vpow2.f32 %v1965_v60  ;;  %v2883_v30 = vpop.eup %2882  ;;  %v1817_v18 = vmul.f32 1.442695, %v1810_v50  ;;  %v2038_v59 = vmul.f32 %v2034_v51, %v3688_v8  ;;  %v2039_v44 = vmul.f32 1.442695, %v2035_v52 }
 0x617   : > { %2894 = vpow2.f32 %v1967_v40  ;;  %v4027_v56 = vpop.eup %2884  ;;  %v2112_v1 = vmul.f32 %v4146_v3, %v3669_v63  ;;  %v1693_v48 = vmul.f32 %v3919_v27, %v1687_v25  ;;  %v2114_v14 = vmul.f32 %v4146_v3, %v3688_v8 }
 0x618   : > { %2896 = vpow2.f32 %v1811_v33  ;;  %v1695_v55 = vmul.f32 %v3930_v34, %v1687_v25  ;;  %v2041_v35 = vmul.f32 1.442695, %v2036_v17  ;;  %v2043_v15 = vmul.f32 1.442695, %v2037_v62 }
 0x619   : > { %v1763_v4 = vpop.permute.xlu1 %1762  ;;  %v2887_v42 = vpop.eup %2886  ;;  %2898 = vpow2.f32 %v1815_v6  ;;  %v1690_v63 = vsel %vm1613_vm0, %v1687_v25, %v4148_v23  ;;  %v2045_v27 = vmul.f32 1.442695, %v2038_v59  ;;  %v2117_v39 = vmul.f32 1.442695, %v2112_v1 }
 0x61a   : > { %v1610_v49 = vpop.permute.xlu0 %1609  ;;  %v2889_v22 = vpop.eup %2888  ;;  %2900 = vpow2.f32 %v1813_v0  ;;  %v1769_v34 = vmul.f32 %v3997_v47, %v1763_v4  ;;  %v2121_v60 = vmul.f32 1.442695, %v2114_v14  ;;  %v1694_v25 = vmul.f32 %v3923_v54, %v1690_v63 }
 0x61b   : > { %2217 = vrot.lane.b32.xlu1 %v2173_v57, %s3017_s0  ;;  %v1617_v2 = vmul.f32 %v2881_v37, %v1610_v49  ;;  %v1619_v11 = vmul.f32 %v2883_v30, %v1610_v49  ;;  %v1614_v5 = vsel %vm1613_vm0, %v1610_v49, %v4147_v10  ;;  %v2891_v16 = vpop.eup %2890  ;;  %2902 = vpow2.f32 %v1817_v18 }
 0x61c   : > { %v4039_v51 = vpop.eup %2892  ;;  %v1618_v36 = vmul.f32 %v2887_v42, %v1614_v5  ;;  %v1620_v46 = vmul.f32 %v2889_v22, %v1614_v5  ;;  %2904 = vpow2.f32 %v1969_v58  ;;  %v1696_v26 = vmul.f32 %v3934_v12, %v1690_v63 }
 0x61d   : > { %v1697_v20 = vadd.f32 %v1693_v48, %v1617_v2  ;;  %v1699_v61 = vadd.f32 %v1695_v55, %v1619_v11  ;;  %v2895_v8 = vpop.eup %2894  ;;  %2906 = vpow2.f32 %v2039_v44  ;;  %v1766_v9 = vsel %vm1613_vm0, %v1763_v4, %v4149_v29 }
 0x61e   : > { %v2897_v40 = vpop.eup %2896  ;;  %v1771_v50 = vmul.f32 %v4013_v43, %v1763_v4  ;;  %2908 = vpow2.f32 %v2043_v15  ;;  %v1698_v37 = vadd.f32 %v1694_v25, %v1618_v36  ;;  %v1700_v49 = vadd.f32 %v1696_v26, %v1620_v46 }
 0x61f   : > { %v2899_v33 = vpop.eup %2898  ;;  %v1773_v57 = vadd.f32 %v1769_v34, %v1697_v20  ;;  %v1921_v12 = vmul.f32 %v3958_v53, %v1915_v7  ;;  %v1923_v62 = vmul.f32 %v3968_v32, %v1915_v7  ;;  %v1770_v43 = vmul.f32 %v4008_v38, %v1766_v9  ;;  %v2143_v32 = vpop.permute.xlu2 %2142 }
 0x620   : > { %v2901_v6 = vpop.eup %2900  ;;  %v1775_v0 = vadd.f32 %v1771_v50, %v1699_v61  ;;  %v1772_v18 = vmul.f32 %v4019_v21, %v1766_v9  ;;  %2910 = vpow2.f32 %v2041_v35  ;;  %v1918_v53 = vsel %vm1613_vm0, %v1915_v7, %v3984_v45 }
 0x621   : > { %v1991_v19 = vpop.permute.xlu1 %1990  ;;  %v2903_v17 = vpop.eup %2902  ;;  %v1774_v3 = vadd.f32 %v1770_v43, %v1698_v37  ;;  %2912 = vpow2.f32 %v2045_v27  ;;  %v1922_v63 = vmul.f32 %v3963_v41, %v1918_v53  ;;  %v1924_v20 = vmul.f32 %v3972_v28, %v1918_v53 }
 0x622   : > { %v1839_v52 = vpop.permute.xlu0 %1838  ;;  %v2905_v30 = vpop.eup %2904  ;;  %v1776_v1 = vadd.f32 %v1772_v18, %v1700_v49  ;;  %v1997_v38 = vmul.f32 %v2891_v16, %v1991_v19  ;;  %v1999_v10 = vmul.f32 %v2895_v8, %v1991_v19  ;;  %2914 = vpow2.f32 %v2117_v39 }
 0x623   : > { %v1842_v47 = vsel %vm1613_vm0, %v1839_v52, %v3981_v24  ;;  %v1845_v58 = vmul.f32 %v2897_v40, %v1839_v52  ;;  %v1847_v54 = vmul.f32 %v2899_v33, %v1839_v52  ;;  %v2907_v2 = vpop.eup %2906  ;;  %2916 = vpow2.f32 %v2121_v60 }
 0x624   : > { %v1846_v59 = vmul.f32 %v2901_v6, %v1842_v47  ;;  %v1848_v24 = vmul.f32 %v2903_v17, %v1842_v47  ;;  %v2909_v48 = vpop.eup %2908  ;;  %v2149_v27 = vmul.f32 %v4021_v31, %v2143_v32  ;;  %v2151_v45 = vmul.f32 %v4027_v56, %v2143_v32 }
 0x625   : > { %v1849_v4 = vadd.f32 %v1845_v58, %v1773_v57  ;;  %v1851_v44 = vadd.f32 %v1847_v54, %v1775_v0  ;;  %v1994_v7 = vsel %vm1613_vm0, %v1991_v19, %v3952_v13  ;;  %v2239_v53 = vstv %s2527_s27 }
 0x626   : > { %v1850_v5 = vadd.f32 %v1846_v59, %v1774_v3  ;;  %v1852_v21 = vadd.f32 %v1848_v24, %v1776_v1  ;;  %v2911_v16 = vpop.eup %2910  ;;  %v1998_v28 = vmul.f32 %v4039_v51, %v1994_v7  ;;  %v2000_v31 = vmul.f32 %v2905_v30, %v1994_v7 }
 0x627   : > { %v1925_v11 = vadd.f32 %v1921_v12, %v1849_v4  ;;  %v1927_v42 = vadd.f32 %v1923_v62, %v1851_v44  ;;  %v2913_v8 = vpop.eup %2912 }
 0x628   : > { %v1926_v34 = vadd.f32 %v1922_v63, %v1850_v5  ;;  %v1928_v39 = vadd.f32 %v1924_v20, %v1852_v21  ;;  %v2915_v60 = vpop.eup %2914 }
 0x629   : > { %v2069_v14 = vpop.permute.xlu1 %2068  ;;  %v2001_v55 = vadd.f32 %v1997_v38, %v1925_v11  ;;  %v2003_v15 = vadd.f32 %v1999_v10, %v1927_v42  ;;  %v2917_v25 = vpop.eup %2916 }
 0x62a   : > { %v2067_v22 = vpop.permute.xlu0 %2066  ;;  %v2004_v19 = vadd.f32 %v2000_v31, %v1928_v39  ;;  %v2002_v29 = vadd.f32 %v1998_v28, %v1926_v34 }
 0x62b   : > { %v2073_v35 = vmul.f32 %v2907_v2, %v2067_v22  ;;  %v2075_v23 = vmul.f32 %v2909_v48, %v2067_v22  ;;  %v2070_v36 = vsel %vm1613_vm0, %v2067_v22, %v2069_v14 }
 0x62c   : > { %v2074_v26 = vmul.f32 %v2911_v16, %v2070_v36  ;;  %v2076_v56 = vmul.f32 %v2913_v8, %v2070_v36 }
 0x62d   : > { %v2077_v46 = vadd.f32 %v2073_v35, %v2001_v55  ;;  %v2079_v61 = vadd.f32 %v2075_v23, %v2003_v15 }
 0x62e   : > { %v2080_v33 = vadd.f32 %v2076_v56, %v2004_v19  ;;  %v2078_v57 = vadd.f32 %v2074_v26, %v2002_v29 }
 0x62f   : > { %v2155_v40 = vadd.f32 %v2151_v45, %v2079_v61  ;;  %v2153_v41 = vadd.f32 %v2149_v27, %v2077_v46 }
 0x631   : > { %2184 = vrot.lane.b32.xlu2 %v2155_v40, %s3017_s0  ;;  %2180 = vrot.lane.b32.xlu1 %v2153_v41, %s3017_s0 }
 0x632   : > { %v2145_v13 = vpop.permute.xlu0 %2144 }
 0x633   : > { %v2146_v9 = vsel %vm1613_vm0, %v2143_v32, %v2145_v13 }
 0x634   : > { %v2150_v50 = vmul.f32 %v2915_v60, %v2146_v9  ;;  %v2152_v52 = vmul.f32 %v2917_v25, %v2146_v9  ;;  %v2208_v60 = vstv %s4076_s28 }
 0x636   : > { %v2156_v47 = vadd.f32 %v2152_v52, %v2080_v33  ;;  %v2154_v58 = vadd.f32 %v2150_v50, %v2078_v57 }
 0x638   : > { %2186 = vrot.lane.b32.xlu0 %v2156_v47, %s3017_s0 }
 0x639   : > { %2182 = vrot.lane.b32.xlu2 %v2154_v58, %s3017_s0 }
 0x66e   : > { %v2222_v51 = vpop.permute.xlu2 %2221 }
 0x66f   : > { %v2234_v49 = vsel %vm2202_vm2, %v2222_v51, 0.0 }
 0x685   : > { %v2220_v6 = vpop.permute.xlu1 %2219  ;;  %v2216_v17 = vpop.permute.xlu0 %2215 }
 0x686   : > { %v2224_v37 = vsel %vm2188_vm1, %v2220_v6, %v2222_v51 }
 0x687   : > { %v2233_v0 = vsel %vm2200_vm3, %v2224_v37, 0.0 }
 0x688   : > { %v2235_v54 = vadd.f32 %v2234_v49, %v2233_v0 }
 0x68a   : > { %2236 = vadd.xlane.f32.xlu1 %v2235_v54 }
 0x68b   : > { %v2185_v30 = vpop.permute.xlu2 %2184 }
 0x68d   : > { %v2218_v12 = vpop.permute.xlu1 %2217 }
 0x68e   : > { %v2223_v62 = vsel %vm2188_vm1, %v2216_v17, %v2218_v12  ;;  %v2229_v43 = vsel %vm2195_vm4, %v2218_v12, 0.0 }
 0x68f   : > { %v2230_v4 = vadd.f32 %v2229_v43, %v2223_v62 }
 0x691   : > { %2231 = vadd.xlane.f32.xlu0 %v2230_v4 }
 0x693   : > { %v2183_v18 = vpop.permute.xlu2 %2182 }
 0x694   : > { %v2196_v24 = vsel %vm2195_vm4, %v2183_v18, 0.0 }
 0x6a3   : > { %v2181_v59 = vpop.permute.xlu1 %2180 }
 0x6a4   : > { %v2189_v44 = vsel %vm2188_vm1, %v2181_v59, %v2183_v18 }
 0x6a5   : > { %v2197_v2 = vadd.f32 %v2196_v24, %v2189_v44 }
 0x6a7   : > { %2198 = vadd.xlane.f32.xlu2 %v2197_v2 }
 0x6aa   : > { %v2187_v11 = vpop.permute.xlu0 %2186 }
 0x6ab   : > { %v2190_v3 = vsel %vm2188_vm1, %v2185_v30, %v2187_v11  ;;  %v2203_v1 = vsel %vm2202_vm2, %v2187_v11, 0.0 }
 0x6ac   : > { %v2201_v42 = vsel %vm2200_vm3, %v2190_v3, 0.0 }
 0x6ad   : > { %v2204_v48 = vadd.f32 %v2203_v1, %v2201_v42 }
 0x6af   : > { %2205 = vadd.xlane.f32.xlu2 %v2204_v48 }
 0x6fd   : > { %v2237_v32 = vpop.xlane.xlu1 %2236 }
 0x6fe   : > { %v2241_v38 = vadd.f32 %v2239_v53, %v2237_v32 }
 0x700   : > { %v2249_v10 = vand.u32 2147483647, %v2241_v38  ;;  %v2243_v34 = vmax.f32 %v2241_v38, 0.0  ;;  %vm2245_vm7 = vcmp.ne.f32.partialorder %v2241_v38, %v2241_v38 }
 0x702   : > { %v2251_v5 = vsub.f32 0.0, %v2249_v10 }
 0x704   : > { %v2254_v21 = vmul.f32 1.442695, %v2251_v5  ;;  %v2232_v14 = vpop.xlane.xlu0 %2231 }
 0x705   : > { %v2240_v22 = vadd.f32 %v2239_v53, %v2232_v14 }
 0x706   : > { %2918 = vpow2.f32 %v2254_v21 }
 0x707   : > { %v2248_v55 = vand.u32 2147483647, %v2240_v22  ;;  %v2242_v29 = vmax.f32 %v2240_v22, 0.0  ;;  %vm2244_vm10 = vcmp.ne.f32.partialorder %v2240_v22, %v2240_v22 }
 0x709   : > { %v2250_v15 = vsub.f32 0.0, %v2248_v55 }
 0x70b   : > { %v2252_v35 = vmul.f32 1.442695, %v2250_v15 }
 0x70c   : > { %v2919_v23 = vpop.eup %2918 }
 0x70d   : > { %v2265_v63 = vadd.f32 1.0, %v2919_v23  ;;  %2920 = vpow2.f32 %v2252_v35  ;;  %v2268_v20 = vmul.f32 -0.5, %v2919_v23  ;;  %v2271_v16 = vand.u32 2147483647, %v2919_v23 }
 0x70f   : > { %2922 = vlog2.f32 %v2265_v63  ;;  %v2269_v27 = vadd.f32 1.0, %v2268_v20  ;;  %vm2272_vm5 = vcmp.lt.f32.partialorder %v2271_v16, 0.0004427343 }
 0x711   : > { %v2270_v8 = vmul.f32 %v2919_v23, %v2269_v27 }
 0x713   : > { %v2921_v45 = vpop.eup %2920 }
 0x714   : > { %v2256_v7 = vadd.f32 1.0, %v2921_v45  ;;  %v2259_v46 = vmul.f32 -0.5, %v2921_v45  ;;  %v2262_v25 = vand.u32 2147483647, %v2921_v45 }
 0x715   : > { %v2923_v36 = vpop.eup %2922 }
 0x716   : > { %v2267_v61 = vmul.f32 0.6931472, %v2923_v36  ;;  %2924 = vlog2.f32 %v2256_v7  ;;  %v2260_v41 = vadd.f32 1.0, %v2259_v46  ;;  %vm2263_vm9 = vcmp.lt.f32.partialorder %v2262_v25, 0.0004427343 }
 0x718   : > { %v2273_v39 = vsel %vm2272_vm5, %v2270_v8, %v2267_v61  ;;  %v2261_v19 = vmul.f32 %v2921_v45, %v2260_v41 }
 0x719   : > { %v2275_v40 = vadd.f32 %v2273_v39, %v2243_v34 }
 0x71a   : > { %v2199_v28 = vpop.xlane.xlu2 %2198 }
 0x71b   : > { %v2277_v31 = vsel %vm2245_vm7, %v2241_v38, %v2275_v40  ;;  %v2209_v26 = vadd.f32 %v2208_v60, %v2199_v28 }
 0x71c   : > { %v2925_v56 = vpop.eup %2924  ;;  %2283 = vst.msk [vmem:[%s701_s21 + $0x8] sm:$0x3] %vm2280_vm6, %v2277_v31 }
 0x71d   : > { %v2258_v13 = vmul.f32 0.6931472, %v2925_v56  ;;  %2279 = vst.msk [vmem:[%s696_s22] sm:$0xff] %vm2278_vm8, %v2209_v26 }
 0x71f   : > { %v2264_v9 = vsel %vm2263_vm9, %v2261_v19, %v2258_v13 }
 0x720   : > { %v2274_v50 = vadd.f32 %v2264_v9, %v2242_v29 }
 0x722   : > { %v2276_v52 = vsel %vm2244_vm10, %v2240_v22, %v2274_v50  ;;  %v2206_v33 = vpop.xlane.xlu2 %2205 }
 0x723   : > { %2282 = vst.msk [vmem:[%s701_s21] sm:$0xff] %vm2278_vm8, %v2276_v52  ;;  %v2210_v57 = vadd.f32 %v2208_v60, %v2206_v33 }
 0x725   : > { %2281 = vst.msk [vmem:[%s696_s22 + $0x8] sm:$0x3] %vm2280_vm6, %v2210_v57 }
 0x726 PF: > { %s4151_s30 = sld [smem:[#allocation12_spill]] }
 0x72c   : > { %s33_s0 = sadd.s32 1, %s4151_s30  }
 0x72d   : > { %p30_p7 = scmp.ge.s32.totalorder %s33_s0, 4  }
 0x72f   :  { %32 = sbr.rel (!%p30_p7) target bundleno = 9 (0x9), region = 157 }
 0x734   :  { %2321 = vsyncpa [#allocation3], 1 }
 0x735   :  { %2323 = vsyncpa [#allocation3 + $0x1], 1 }
 0x736   :  { %2324 = vsyncpa [#allocation5], 1 }
 0x737   :  { %2325 = vsyncpa [#allocation8], 1 }

</bundles_post_ra>
